<compile_context>
chip_gen: v6e
topology: v6e:2x2x1
jax: 0.10.0
libtpu: 0.0.40
codegen_flags: <defaults>
</compile_context>

<pallas_src>
import functools
import math

import jax
import jax.numpy as jnp
import numpy as np
from jax import lax
from jax.experimental import pallas as pl
from jax.experimental.pallas import tpu as pltpu

EOS_TOKEN = 1
MATMUL_DTYPE = jnp.bfloat16   # MXU operand dtype; accumulation stays f32


# ----------------------------- positional encoding (host-side glue) -----------------------------
def make_pe(n: int, d_inp: int, d_model: int, freq: float = 10000.0):
    """PE from the reference (batch dim is a pure broadcast)."""
    position = np.arange(n, dtype=np.float32)[:, None]
    div_term = np.exp(np.arange(0, d_inp, 2, dtype=np.float32) * -(math.log(freq) / d_model))
    pe = np.zeros((n, d_model), dtype=np.float32)
    pe[:, 0::2] = np.sin(position * div_term)
    pe[:, 1::2] = np.cos(position * div_term)
    return jnp.asarray(pe)


# ----------------------------- in-kernel helpers (all f32 elementwise) -----------------------------
def _layernorm_k(x, gamma, beta, eps=1e-5):
    mean = jnp.mean(x, axis=-1, keepdims=True)
    c = x - mean
    var = jnp.mean(c * c, axis=-1, keepdims=True)
    return c * lax.rsqrt(var + eps) * gamma + beta


def _softmax_last_k(x):
    m = jnp.max(x, axis=-1, keepdims=True)
    e = jnp.exp(x - m)
    # approx reciprocal (EUP slot); ~1e-4 rel error, acceptable for inference.
    return e * pl.reciprocal(jnp.sum(e, axis=-1, keepdims=True), approx=True)


def _gelu_erf(x):
    return x * 0.5 * (1.0 + lax.erf(x * (1.0 / math.sqrt(2.0))))


# ----------------------------- Pallas kernel -----------------------------
def _transformer_kernel(ids_ref, pe_ref, emb_ref,
                        wqkv_ref, wo_ref,
                        ga_ref, ba_ref, gf_ref, bf_ref, gi_ref, bi_ref,
                        w1_ref, b1_ref, w2_ref, b2_ref,
                        gc_ref, bc_ref, wc_ref, bcl_ref,
                        out_ref,
                        *, num_layers, num_heads, d_k, d_v, seq_len, eos_token):
    n = seq_len
    rows = ids_ref.shape[0]            # = bb * n rows in this batch block
    bb = rows // n
    vocab, d_model = emb_ref.shape
    HK = num_heads * d_k
    HV = num_heads * d_v
    mm_dtype = wqkv_ref.dtype          # bf16 operands for MXU dots

    ids = ids_ref[...]                                                   # (rows, 1) int32

    # --- embedding lookup as a one-hot MXU matmul (fine at small vocab) ---
    # TODO(synk): for large vocab, replace with a scalar-prefetch-driven row gather
    # (pl.Element / manual DMA) instead of a resident (vocab, d) table + one-hot matmul.
    iota = lax.broadcasted_iota(jnp.int32, (rows, vocab), 1)
    onehot = (ids == iota).astype(mm_dtype)                              # exact 0/1 in bf16
    x2 = jnp.dot(onehot, emb_ref[...], preferred_element_type=jnp.float32)   # (rows, d) f32

    # --- + positional encoding, broadcast over batch (PE passed once, not tiled) ---
    x2 = (x2.reshape(bb, n, d_model) + pe_ref[...]).reshape(rows, d_model)

    # --- mask quantities, hoisted out of the layer/head loops ---
    ids3 = ids.reshape(bb, n, 1)
    pad_f3 = (ids3 == eos_token).astype(jnp.float32)                     # (bb, n, 1): 1 where EOS
    keep_f3 = 1.0 - pad_f3                                               # pooling mask / row keep
    fill_f3 = pad_f3 * (-1e10)                                           # masked_fill value per row

    # --- per-head column masks (constants, hoisted) ---
    col_k = lax.broadcasted_iota(jnp.int32, (1, 1, HK), 2)
    col_v = lax.broadcasted_iota(jnp.int32, (1, 1, HV), 2)
    mk = [((col_k >= hh * d_k) & (col_k < (hh + 1) * d_k)).astype(jnp.float32)
          for hh in range(num_heads)]
    mv = [((col_v >= hh * d_v) & (col_v < (hh + 1) * d_v)).astype(jnp.float32)
          for hh in range(num_heads)]

    # TODO(synk): at production num_layers/d_model, move this loop onto a grid axis with
    # per-layer-blocked weight BlockSpecs (double-buffered) instead of resident stacked
    # weights + static unroll — required to fit v7x's 64 MiB VMEM and bound live ranges.
    for l in range(num_layers):                                          # tiny L, static unroll
        wqkv = wqkv_ref[l]                                               # (d, 2HK+HV), Q pre-scaled, bf16
        wo = wo_ref[l]                                                   # (HV, d), bf16
        ga, ba = ga_ref[l], ba_ref[l]
        gf, bf = gf_ref[l], bf_ref[l]
        gi, bi = gi_ref[l], bi_ref[l]
        w1, b1 = w1_ref[l], b1_ref[l]
        w2, b2 = w2_ref[l], b2_ref[l]

        # --- multi-head self attention branch ---
        h_ln = _layernorm_k(x2, ga, ba)                                  # ln_attn (f32)
        qkv = jnp.dot(h_ln.astype(mm_dtype), wqkv,
                      preferred_element_type=jnp.float32)                # fused QKV, one matmul

        # Slice only at HK/HV (32-column) boundaries.
        q_all = qkv[:, :HK].reshape(bb, n, HK)
        k_all = qkv[:, HK:2 * HK].reshape(bb, n, HK)
        v_all = qkv[:, 2 * HK:2 * HK + HV].reshape(bb, n, HV)
        q_mm = q_all.astype(mm_dtype)

        # Per-head scores/contexts via full-width masked operands: no d_k-wide slices,
        # each head's context lands in its own disjoint column block of `ctx`, so a
        # single Wo matmul replaces per-head projections + accumulation.
        ctx = jnp.zeros((bb, n, HV), jnp.float32)
        for hh in range(num_heads):
            s = jnp.einsum('bqd,bkd->bqk',
                           q_mm, (k_all * mk[hh]).astype(mm_dtype),
                           preferred_element_type=jnp.float32)
            # masked_fill on whole query rows (exact replacement for finite scores,
            # matching the reference's masked_fill(mask == 0, -1e10) semantics).
            s = s * keep_f3 + fill_f3
            p = _softmax_last_k(s)                                       # f32 softmax
            ctx = ctx + jnp.einsum('bqk,bkd->bqd',
                                   p.astype(mm_dtype),
                                   (v_all * mv[hh]).astype(mm_dtype),
                                   preferred_element_type=jnp.float32)
        attn = x2 + jnp.dot(ctx.reshape(rows, HV).astype(mm_dtype), wo,
                            preferred_element_type=jnp.float32)          # residual (dropout=identity)

        # --- feed-forward branch (ln_ffn then FFN's own LayerNorm, as in the module) ---
        r = _layernorm_k(attn, gf, bf)
        r = _layernorm_k(r, gi, bi)
        r = jnp.dot(r.astype(mm_dtype), w1, preferred_element_type=jnp.float32) + b1
        r = _gelu_erf(r)                                                 # f32 GELU
        r = jnp.dot(r.astype(mm_dtype), w2, preferred_element_type=jnp.float32) + b2
        x2 = attn + r                                                    # residual (dropout=identity)

    # --- masked mean-pool over the sequence (divide by n, as in the module) ---
    pooled = jnp.sum(x2.reshape(bb, n, d_model) * keep_f3, axis=1) * (1.0 / n)   # (bb, d)

    # --- classifier: LayerNorm -> Linear -> Sigmoid (kept f32 for final precision) ---
    pc = _layernorm_k(pooled, gc_ref[...], bc_ref[...])
    logits = jnp.dot(pc, wc_ref[...], preferred_element_type=jnp.float32) + bcl_ref[...]
    out_ref[...] = (1.0 / (1.0 + jnp.exp(-logits))).astype(out_ref.dtype)


# ----------------------------- wrapper -----------------------------
def _num_tensorcores() -> int:
    """TensorCores per chip; robust query via pltpu.get_tpu_info with fallback."""
    try:
        info = pltpu.get_tpu_info()
        for attr in ("num_cores", "core_count", "num_tensorcores",
                     "tensorcore_count", "cores_per_chip"):
            v = getattr(info, attr, None)
            if isinstance(v, int) and v >= 1:
                return v
    except Exception:
        pass
    try:
        kind = jax.devices()[0].device_kind.lower()
        if ("v7" in kind) or ("7x" in kind):
            return 2
    except Exception:
        pass
    return 1


def pack_params(raw, *, d_k, matmul_dtype=MATMUL_DTYPE):
    """Pre-transpose to (in, out), fuse QKV (1/sqrt(dk) folded into Q), bf16 matmul weights."""
    scale = 1.0 / math.sqrt(d_k)

    def heads_to_cols(w):                       # (L, H, f, D) -> (L, D, H*f)
        L, H, f, D = w.shape
        return jnp.transpose(w, (0, 3, 1, 2)).reshape(L, D, H * f)

    wq_t = heads_to_cols(raw['wq']) * scale
    wk_t = heads_to_cols(raw['wk'])
    wv_t = heads_to_cols(raw['wv'])
    wqkv = jnp.concatenate([wq_t, wk_t, wv_t], axis=-1).astype(matmul_dtype)  # (L, D, 2HK+HV)
    wo_t = jnp.transpose(raw['wo'], (0, 2, 1)).astype(matmul_dtype)           # (L, H*dv, D)
    w1_t = jnp.transpose(raw['w1'], (0, 2, 1)).astype(matmul_dtype)           # (L, D, dff)
    w2_t = jnp.transpose(raw['w2'], (0, 2, 1)).astype(matmul_dtype)           # (L, dff, D)
    ln = lambda a: a[:, None, :].astype(jnp.float32)                          # (L, D) -> (L, 1, D)
    f32 = lambda a: a.astype(jnp.float32)
    return (wqkv, wo_t,
            ln(raw['g_attn']), ln(raw['b_attn']),
            ln(raw['g_ffn']), ln(raw['b_ffn']),
            ln(raw['g_in']), ln(raw['b_in']),
            w1_t, f32(raw['b1'][:, None, :]), w2_t, f32(raw['b2'][:, None, :]),
            f32(raw['g_cls'][None, :]), f32(raw['b_cls'][None, :]),
            f32(raw['w_cls'].T), f32(raw['b_cls_lin'][None, :]))


def _full_spec(arr):
    nd = arr.ndim
    return pl.BlockSpec(arr.shape, lambda i, _nd=nd: (0,) * _nd)


def transformer_forward(ids, raw, *, num_layers, num_heads, d_k, d_v):
    b, n = ids.shape
    vocab, d_model = raw['emb'].shape
    num_classes = raw['w_cls'].shape[0]

    packed = pack_params(raw, d_k=d_k)

    # Multi-TC chips (v7x): split the batch evenly across TensorCores (grid = #cores,
    # "parallel"); single-TC chips (v5e/v6e): one full-batch block (no grid overhead).
    ncores = _num_tensorcores()
    bb = b // ncores if (ncores > 1 and b % ncores == 0) else b
    grid = (b // bb,)
    rows = bb * n

    ids_flat = ids.reshape(b * n, 1).astype(jnp.int32)
    pe = raw['pe'].astype(jnp.float32)                   # (n, d_model), resident, NOT tiled
    emb = raw['emb'].astype(MATMUL_DTYPE)                # bf16 MXU operand

    in_specs = ([pl.BlockSpec((rows, 1), lambda i: (i, 0))]
                + [_full_spec(a) for a in (pe, emb) + packed])
    out_specs = pl.BlockSpec((bb, num_classes), lambda i: (i, 0))

    kernel = functools.partial(
        _transformer_kernel, num_layers=num_layers, num_heads=num_heads,
        d_k=d_k, d_v=d_v, seq_len=n, eos_token=EOS_TOKEN)

    out = pl.pallas_call(
        kernel,
        out_shape=jax.ShapeDtypeStruct((b, num_classes), jnp.float32),
        grid=grid,
        in_specs=in_specs,
        out_specs=out_specs,
        compiler_params=pltpu.CompilerParams(dimension_semantics=("parallel",)),
    )(ids_flat, pe, emb, *packed)
    return out


# ----------------------------- pure-JAX reference (mirrors the PyTorch module) -----------------------------
def _ln_ref(x, g, b, eps=1e-5):
    m = jnp.mean(x, axis=-1, keepdims=True)
    v = jnp.mean((x - m) ** 2, axis=-1, keepdims=True)
    return (x - m) / jnp.sqrt(v + eps) * g + b


def _gelu_ref(x):
    return x * 0.5 * (1.0 + lax.erf(x / math.sqrt(2.0)))


def reference_forward(ids, raw, *, num_layers, num_heads):
    emb = raw['emb']
    x = emb[ids].astype(jnp.float32)                                     # (b, n, d)
    b, n, d = x.shape
    x = x + raw['pe'][None]
    maskf = (ids != EOS_TOKEN)[..., None].astype(jnp.float32)            # (b, n, 1)

    for l in range(num_layers):
        h = _ln_ref(x, raw['g_attn'][l], raw['b_attn'][l])
        head_outs = []
        for hh in range(num_heads):
            q = h @ raw['wq'][l, hh].T
            k = h @ raw['wk'][l, hh].T
            v = h @ raw['wv'][l, hh].T
            dk = k.shape[-1]
            w = jnp.einsum('bqd,bkd->bqk', q, k) / math.sqrt(dk)
            w = jnp.where(maskf == 0.0, -1e10, w)                        # row (query) masked_fill
            w = jax.nn.softmax(w, axis=-1)
            head_outs.append(jnp.einsum('bqk,bkd->bqd', w, v))
        cat = jnp.concatenate(head_outs, axis=-1)
        attn = cat @ raw['wo'][l].T
        attn = x + attn
        r = _ln_ref(attn, raw['g_ffn'][l], raw['b_ffn'][l])
        r = _ln_ref(r, raw['g_in'][l], raw['b_in'][l])
        r = r @ raw['w1'][l].T + raw['b1'][l]
        r = _gelu_ref(r)
        r = r @ raw['w2'][l].T + raw['b2'][l]
        x = attn + r

    pooled = jnp.sum(x * maskf, axis=1) / n
    pc = _ln_ref(pooled, raw['g_cls'], raw['b_cls'])
    logits = pc @ raw['w_cls'].T + raw['b_cls_lin']
    return jax.nn.sigmoid(logits)


# ----------------------------- main -----------------------------
if __name__ == "__main__":
    # small but module-consistent hyper-parameters
    num_layers = 2
    num_heads = 2
    d_model = 32
    d_k = d_v = d_model // num_heads          # 16
    d_ff = 64
    num_classes = 6
    vocab = 32
    b, n = 2, 8

    key = jax.random.PRNGKey(0)
    ks = jax.random.split(key, 20)
    s = 0.05

    ids = jax.random.randint(ks[0], (b, n), 0, vocab, dtype=jnp.int32)
    # guarantee some EOS (padding) tokens so the query-row mask path is exercised
    ids = ids.at[0, n - 1].set(EOS_TOKEN)
    ids = ids.at[1, n - 2].set(EOS_TOKEN)
    ids = ids.at[1, n - 1].set(EOS_TOKEN)

    rn = lambda k, shape: jax.random.normal(k, shape, jnp.float32)
    raw = {
        'emb': rn(ks[1], (vocab, d_model)) * 0.5,
        'pe': make_pe(n, d_model, d_model),
        # per-layer weights in PyTorch (out, in) layout, stacked over layers/heads
        'wq': rn(ks[2], (num_layers, num_heads, d_k, d_model)) * s,
        'wk': rn(ks[3], (num_layers, num_heads, d_k, d_model)) * s,
        'wv': rn(ks[4], (num_layers, num_heads, d_v, d_model)) * s,
        'wo': rn(ks[5], (num_layers, d_model, num_heads * d_v)) * s,
        'g_attn': 1.0 + rn(ks[6], (num_layers, d_model)) * s,
        'b_attn': rn(ks[7], (num_layers, d_model)) * s,
        'g_ffn': 1.0 + rn(ks[8], (num_layers, d_model)) * s,
        'b_ffn': rn(ks[9], (num_layers, d_model)) * s,
        'g_in': 1.0 + rn(ks[10], (num_layers, d_model)) * s,
        'b_in': rn(ks[11], (num_layers, d_model)) * s,
        'w1': rn(ks[12], (num_layers, d_ff, d_model)) * s,
        'b1': rn(ks[13], (num_layers, d_ff)) * s,
        'w2': rn(ks[14], (num_layers, d_model, d_ff)) * s,
        'b2': rn(ks[15], (num_layers, d_model)) * s,
        # classifier (LayerNorm + Linear + Sigmoid)
        'g_cls': 1.0 + rn(ks[16], (d_model,)) * s,
        'b_cls': rn(ks[17], (d_model,)) * s,
        'w_cls': rn(ks[18], (num_classes, d_model)) * s,
        'b_cls_lin': rn(ks[19], (num_classes,)) * s,
    }

    out = transformer_forward(ids, raw, num_layers=num_layers, num_heads=num_heads,
                              d_k=d_k, d_v=d_v)
    out = jax.block_until_ready(out)

    ref = jax.block_until_ready(
        reference_forward(ids, raw, num_layers=num_layers, num_heads=num_heads))

    assert out.shape == (b, num_classes)
    np.testing.assert_allclose(np.asarray(out), np.asarray(ref), rtol=1e-2, atol=1e-2)

    # TODO(synk): dropout is implemented as identity (eval-mode semantics only).
    print("KERNEL_OK")
</pallas_src>

<mosaic_0001>
module attributes {stable_mosaic.version = 11 : i64} {
  func.func @_transformer_kernel(%arg0: i32, %arg1: memref<16x1xi32, #tpu.memory_space<vmem>>, %arg2: memref<8x32xf32, #tpu.memory_space<vmem>>, %arg3: memref<32x32xbf16, #tpu.memory_space<vmem>>, %arg4: memref<2x32x96xbf16, #tpu.memory_space<vmem>>, %arg5: memref<2x32x32xbf16, #tpu.memory_space<vmem>>, %arg6: memref<2x1x32xf32, #tpu.memory_space<vmem>>, %arg7: memref<2x1x32xf32, #tpu.memory_space<vmem>>, %arg8: memref<2x1x32xf32, #tpu.memory_space<vmem>>, %arg9: memref<2x1x32xf32, #tpu.memory_space<vmem>>, %arg10: memref<2x1x32xf32, #tpu.memory_space<vmem>>, %arg11: memref<2x1x32xf32, #tpu.memory_space<vmem>>, %arg12: memref<2x32x64xbf16, #tpu.memory_space<vmem>>, %arg13: memref<2x1x64xf32, #tpu.memory_space<vmem>>, %arg14: memref<2x64x32xbf16, #tpu.memory_space<vmem>>, %arg15: memref<2x1x32xf32, #tpu.memory_space<vmem>>, %arg16: memref<1x32xf32, #tpu.memory_space<vmem>>, %arg17: memref<1x32xf32, #tpu.memory_space<vmem>>, %arg18: memref<32x6xf32, #tpu.memory_space<vmem>>, %arg19: memref<1x6xf32, #tpu.memory_space<vmem>>, %arg20: memref<2x6xf32, #tpu.memory_space<vmem>>) attributes {dimension_semantics = [#tpu.dimension_semantics<parallel>], iteration_bounds = array<i64: 1>, scalar_prefetch = 0 : i64, scratch_operands = 0 : i64, tpu.core_type = #tpu.core_type<tc>, window_params = [{transform_indices = @transform_0, window_bounds = array<i64: 16, 1>}, {pipeline_mode = #tpu.pipeline_mode<synchronous>, transform_indices = @transform_1, window_bounds = array<i64: 8, 32>}, {pipeline_mode = #tpu.pipeline_mode<synchronous>, transform_indices = @transform_2, window_bounds = array<i64: 32, 32>}, {pipeline_mode = #tpu.pipeline_mode<synchronous>, transform_indices = @transform_3, window_bounds = array<i64: 2, 32, 96>}, {pipeline_mode = #tpu.pipeline_mode<synchronous>, transform_indices = @transform_4, window_bounds = array<i64: 2, 32, 32>}, {pipeline_mode = #tpu.pipeline_mode<synchronous>, transform_indices = @transform_5, window_bounds = array<i64: 2, 1, 32>}, {pipeline_mode = #tpu.pipeline_mode<synchronous>, transform_indices = @transform_6, window_bounds = array<i64: 2, 1, 32>}, {pipeline_mode = #tpu.pipeline_mode<synchronous>, transform_indices = @transform_7, window_bounds = array<i64: 2, 1, 32>}, {pipeline_mode = #tpu.pipeline_mode<synchronous>, transform_indices = @transform_8, window_bounds = array<i64: 2, 1, 32>}, {pipeline_mode = #tpu.pipeline_mode<synchronous>, transform_indices = @transform_9, window_bounds = array<i64: 2, 1, 32>}, {pipeline_mode = #tpu.pipeline_mode<synchronous>, transform_indices = @transform_10, window_bounds = array<i64: 2, 1, 32>}, {pipeline_mode = #tpu.pipeline_mode<synchronous>, transform_indices = @transform_11, window_bounds = array<i64: 2, 32, 64>}, {pipeline_mode = #tpu.pipeline_mode<synchronous>, transform_indices = @transform_12, window_bounds = array<i64: 2, 1, 64>}, {pipeline_mode = #tpu.pipeline_mode<synchronous>, transform_indices = @transform_13, window_bounds = array<i64: 2, 64, 32>}, {pipeline_mode = #tpu.pipeline_mode<synchronous>, transform_indices = @transform_14, window_bounds = array<i64: 2, 1, 32>}, {pipeline_mode = #tpu.pipeline_mode<synchronous>, transform_indices = @transform_15, window_bounds = array<i64: 1, 32>}, {pipeline_mode = #tpu.pipeline_mode<synchronous>, transform_indices = @transform_16, window_bounds = array<i64: 1, 32>}, {pipeline_mode = #tpu.pipeline_mode<synchronous>, transform_indices = @transform_17, window_bounds = array<i64: 32, 6>}, {pipeline_mode = #tpu.pipeline_mode<synchronous>, transform_indices = @transform_18, window_bounds = array<i64: 1, 6>}, {transform_indices = @transform_19, window_bounds = array<i64: 2, 6>}]} {
    %c0 = arith.constant 0 : index
    %c0_0 = arith.constant 0 : index
    %0 = vector.load %arg1[%c0, %c0_0] : memref<16x1xi32, #tpu.memory_space<vmem>>, vector<16x1xi32>
    %1 = tpu.iota {dimensions = array<i32: 1>} : vector<16x32xi32>
    %2 = vector.broadcast %0 : vector<16x1xi32> to vector<16x32xi32>
    %3 = arith.cmpi eq, %2, %1 : vector<16x32xi32>
    %4 = arith.extui %3 : vector<16x32xi1> to vector<16x32xi32>
    %5 = arith.sitofp %4 : vector<16x32xi32> to vector<16x32xf32>
    %6 = arith.truncf %5 : vector<16x32xf32> to vector<16x32xbf16>
    %c0_1 = arith.constant 0 : index
    %c0_2 = arith.constant 0 : index
    %7 = vector.load %arg3[%c0_1, %c0_2] : memref<32x32xbf16, #tpu.memory_space<vmem>>, vector<32x32xbf16>
    %cst = arith.constant dense<0.000000e+00> : vector<16x32xf32>
    %8 = tpu.matmul %6, %7, %cst {dimension_numbers = #tpu.dot_dimension_numbers<[1], [0], [0], [1], [0, 0, 1, 1], [], []>} : vector<16x32xbf16>, vector<32x32xbf16>, vector<16x32xf32> -> vector<16x32xf32>
    %9 = vector.shape_cast %8 : vector<16x32xf32> to vector<2x8x32xf32>
    %c0_3 = arith.constant 0 : index
    %c0_4 = arith.constant 0 : index
    %10 = vector.load %arg2[%c0_3, %c0_4] : memref<8x32xf32, #tpu.memory_space<vmem>>, vector<8x32xf32>
    %11 = vector.shape_cast %10 : vector<8x32xf32> to vector<1x8x32xf32>
    %12 = vector.broadcast %11 : vector<1x8x32xf32> to vector<2x8x32xf32>
    %13 = arith.addf %9, %12 : vector<2x8x32xf32>
    %14 = vector.shape_cast %13 : vector<2x8x32xf32> to vector<16x32xf32>
    %15 = vector.shape_cast %0 : vector<16x1xi32> to vector<2x8x1xi32>
    %c1_i32 = arith.constant 1 : i32
    %16 = vector.broadcast %c1_i32 : i32 to vector<2x8x1xi32>
    %17 = arith.cmpi eq, %15, %16 : vector<2x8x1xi32>
    %18 = arith.extui %17 : vector<2x8x1xi1> to vector<2x8x1xi32>
    %19 = arith.sitofp %18 : vector<2x8x1xi32> to vector<2x8x1xf32>
    %cst_5 = arith.constant 1.000000e+00 : f32
    %20 = vector.broadcast %cst_5 : f32 to vector<2x8x1xf32>
    %21 = arith.subf %20, %19 : vector<2x8x1xf32>
    %cst_6 = arith.constant -1.000000e+10 : f32
    %22 = vector.broadcast %cst_6 : f32 to vector<2x8x1xf32>
    %23 = arith.mulf %19, %22 : vector<2x8x1xf32>
    %24 = tpu.iota {dimensions = array<i32: 2>} : vector<1x1x32xi32>
    %25 = tpu.iota {dimensions = array<i32: 2>} : vector<1x1x32xi32>
    %c0_i32 = arith.constant 0 : i32
    %26 = vector.broadcast %c0_i32 : i32 to vector<1x1x32xi32>
    %27 = arith.cmpi sge, %24, %26 : vector<1x1x32xi32>
    %c16_i32 = arith.constant 16 : i32
    %28 = vector.broadcast %c16_i32 : i32 to vector<1x1x32xi32>
    %29 = arith.cmpi slt, %24, %28 : vector<1x1x32xi32>
    %30 = arith.andi %27, %29 : vector<1x1x32xi1>
    %31 = arith.extui %30 : vector<1x1x32xi1> to vector<1x1x32xi32>
    %32 = arith.sitofp %31 : vector<1x1x32xi32> to vector<1x1x32xf32>
    %c16_i32_7 = arith.constant 16 : i32
    %33 = vector.broadcast %c16_i32_7 : i32 to vector<1x1x32xi32>
    %34 = arith.cmpi sge, %24, %33 : vector<1x1x32xi32>
    %c32_i32 = arith.constant 32 : i32
    %35 = vector.broadcast %c32_i32 : i32 to vector<1x1x32xi32>
    %36 = arith.cmpi slt, %24, %35 : vector<1x1x32xi32>
    %37 = arith.andi %34, %36 : vector<1x1x32xi1>
    %38 = arith.extui %37 : vector<1x1x32xi1> to vector<1x1x32xi32>
    %39 = arith.sitofp %38 : vector<1x1x32xi32> to vector<1x1x32xf32>
    %c0_i32_8 = arith.constant 0 : i32
    %40 = vector.broadcast %c0_i32_8 : i32 to vector<1x1x32xi32>
    %41 = arith.cmpi sge, %25, %40 : vector<1x1x32xi32>
    %c16_i32_9 = arith.constant 16 : i32
    %42 = vector.broadcast %c16_i32_9 : i32 to vector<1x1x32xi32>
    %43 = arith.cmpi slt, %25, %42 : vector<1x1x32xi32>
    %44 = arith.andi %41, %43 : vector<1x1x32xi1>
    %45 = arith.extui %44 : vector<1x1x32xi1> to vector<1x1x32xi32>
    %46 = arith.sitofp %45 : vector<1x1x32xi32> to vector<1x1x32xf32>
    %c16_i32_10 = arith.constant 16 : i32
    %47 = vector.broadcast %c16_i32_10 : i32 to vector<1x1x32xi32>
    %48 = arith.cmpi sge, %25, %47 : vector<1x1x32xi32>
    %c32_i32_11 = arith.constant 32 : i32
    %49 = vector.broadcast %c32_i32_11 : i32 to vector<1x1x32xi32>
    %50 = arith.cmpi slt, %25, %49 : vector<1x1x32xi32>
    %51 = arith.andi %48, %50 : vector<1x1x32xi1>
    %52 = arith.extui %51 : vector<1x1x32xi1> to vector<1x1x32xi32>
    %53 = arith.sitofp %52 : vector<1x1x32xi32> to vector<1x1x32xf32>
    %c0_12 = arith.constant 0 : index
    %c0_13 = arith.constant 0 : index
    %c0_14 = arith.constant 0 : index
    %54 = vector.load %arg4[%c0_12, %c0_13, %c0_14] : memref<2x32x96xbf16, #tpu.memory_space<vmem>>, vector<1x32x96xbf16>
    %55 = vector.shape_cast %54 : vector<1x32x96xbf16> to vector<32x96xbf16>
    %c0_15 = arith.constant 0 : index
    %c0_16 = arith.constant 0 : index
    %c0_17 = arith.constant 0 : index
    %56 = vector.load %arg5[%c0_15, %c0_16, %c0_17] : memref<2x32x32xbf16, #tpu.memory_space<vmem>>, vector<1x32x32xbf16>
    %57 = vector.shape_cast %56 : vector<1x32x32xbf16> to vector<32x32xbf16>
    %c0_18 = arith.constant 0 : index
    %c0_19 = arith.constant 0 : index
    %c0_20 = arith.constant 0 : index
    %58 = vector.load %arg6[%c0_18, %c0_19, %c0_20] : memref<2x1x32xf32, #tpu.memory_space<vmem>>, vector<1x1x32xf32>
    %59 = vector.shape_cast %58 : vector<1x1x32xf32> to vector<1x32xf32>
    %c0_21 = arith.constant 0 : index
    %c0_22 = arith.constant 0 : index
    %c0_23 = arith.constant 0 : index
    %60 = vector.load %arg7[%c0_21, %c0_22, %c0_23] : memref<2x1x32xf32, #tpu.memory_space<vmem>>, vector<1x1x32xf32>
    %61 = vector.shape_cast %60 : vector<1x1x32xf32> to vector<1x32xf32>
    %c0_24 = arith.constant 0 : index
    %c0_25 = arith.constant 0 : index
    %c0_26 = arith.constant 0 : index
    %62 = vector.load %arg8[%c0_24, %c0_25, %c0_26] : memref<2x1x32xf32, #tpu.memory_space<vmem>>, vector<1x1x32xf32>
    %63 = vector.shape_cast %62 : vector<1x1x32xf32> to vector<1x32xf32>
    %c0_27 = arith.constant 0 : index
    %c0_28 = arith.constant 0 : index
    %c0_29 = arith.constant 0 : index
    %64 = vector.load %arg9[%c0_27, %c0_28, %c0_29] : memref<2x1x32xf32, #tpu.memory_space<vmem>>, vector<1x1x32xf32>
    %65 = vector.shape_cast %64 : vector<1x1x32xf32> to vector<1x32xf32>
    %c0_30 = arith.constant 0 : index
    %c0_31 = arith.constant 0 : index
    %c0_32 = arith.constant 0 : index
    %66 = vector.load %arg10[%c0_30, %c0_31, %c0_32] : memref<2x1x32xf32, #tpu.memory_space<vmem>>, vector<1x1x32xf32>
    %67 = vector.shape_cast %66 : vector<1x1x32xf32> to vector<1x32xf32>
    %c0_33 = arith.constant 0 : index
    %c0_34 = arith.constant 0 : index
    %c0_35 = arith.constant 0 : index
    %68 = vector.load %arg11[%c0_33, %c0_34, %c0_35] : memref<2x1x32xf32, #tpu.memory_space<vmem>>, vector<1x1x32xf32>
    %69 = vector.shape_cast %68 : vector<1x1x32xf32> to vector<1x32xf32>
    %c0_36 = arith.constant 0 : index
    %c0_37 = arith.constant 0 : index
    %c0_38 = arith.constant 0 : index
    %70 = vector.load %arg12[%c0_36, %c0_37, %c0_38] : memref<2x32x64xbf16, #tpu.memory_space<vmem>>, vector<1x32x64xbf16>
    %71 = vector.shape_cast %70 : vector<1x32x64xbf16> to vector<32x64xbf16>
    %c0_39 = arith.constant 0 : index
    %c0_40 = arith.constant 0 : index
    %c0_41 = arith.constant 0 : index
    %72 = vector.load %arg13[%c0_39, %c0_40, %c0_41] : memref<2x1x64xf32, #tpu.memory_space<vmem>>, vector<1x1x64xf32>
    %73 = vector.shape_cast %72 : vector<1x1x64xf32> to vector<1x64xf32>
    %c0_42 = arith.constant 0 : index
    %c0_43 = arith.constant 0 : index
    %c0_44 = arith.constant 0 : index
    %74 = vector.load %arg14[%c0_42, %c0_43, %c0_44] : memref<2x64x32xbf16, #tpu.memory_space<vmem>>, vector<1x64x32xbf16>
    %75 = vector.shape_cast %74 : vector<1x64x32xbf16> to vector<64x32xbf16>
    %c0_45 = arith.constant 0 : index
    %c0_46 = arith.constant 0 : index
    %c0_47 = arith.constant 0 : index
    %76 = vector.load %arg15[%c0_45, %c0_46, %c0_47] : memref<2x1x32xf32, #tpu.memory_space<vmem>>, vector<1x1x32xf32>
    %77 = vector.shape_cast %76 : vector<1x1x32xf32> to vector<1x32xf32>
    %cst_48 = arith.constant dense<0.000000e+00> : vector<16xf32>
    %78 = vector.multi_reduction <add>, %14, %cst_48 [1] : vector<16x32xf32> to vector<16xf32>
    %79 = vector.shape_cast %78 : vector<16xf32> to vector<16x1xf32>
    %cst_49 = arith.constant 3.200000e+01 : f32
    %80 = vector.broadcast %cst_49 : f32 to vector<16x1xf32>
    %81 = arith.divf %79, %80 : vector<16x1xf32>
    %82 = vector.broadcast %81 : vector<16x1xf32> to vector<16x32xf32>
    %83 = arith.subf %14, %82 : vector<16x32xf32>
    %84 = arith.mulf %83, %83 : vector<16x32xf32>
    %cst_50 = arith.constant dense<0.000000e+00> : vector<16xf32>
    %85 = vector.multi_reduction <add>, %84, %cst_50 [1] : vector<16x32xf32> to vector<16xf32>
    %86 = vector.shape_cast %85 : vector<16xf32> to vector<16x1xf32>
    %cst_51 = arith.constant 3.200000e+01 : f32
    %87 = vector.broadcast %cst_51 : f32 to vector<16x1xf32>
    %88 = arith.divf %86, %87 : vector<16x1xf32>
    %cst_52 = arith.constant 9.99999974E-6 : f32
    %89 = vector.broadcast %cst_52 : f32 to vector<16x1xf32>
    %90 = arith.addf %88, %89 : vector<16x1xf32>
    %91 = math.rsqrt %90 : vector<16x1xf32>
    %92 = vector.broadcast %91 : vector<16x1xf32> to vector<16x32xf32>
    %93 = arith.mulf %83, %92 : vector<16x32xf32>
    %94 = vector.broadcast %59 : vector<1x32xf32> to vector<16x32xf32>
    %95 = arith.mulf %93, %94 : vector<16x32xf32>
    %96 = vector.broadcast %61 : vector<1x32xf32> to vector<16x32xf32>
    %97 = arith.addf %95, %96 : vector<16x32xf32>
    %98 = arith.truncf %97 : vector<16x32xf32> to vector<16x32xbf16>
    %cst_53 = arith.constant dense<0.000000e+00> : vector<16x96xf32>
    %99 = tpu.matmul %98, %55, %cst_53 {dimension_numbers = #tpu.dot_dimension_numbers<[1], [0], [0], [1], [0, 0, 1, 1], [], []>} : vector<16x32xbf16>, vector<32x96xbf16>, vector<16x96xf32> -> vector<16x96xf32>
    %100 = vector.extract_strided_slice %99 {offsets = [0, 0], sizes = [16, 32], strides = [1, 1]} : vector<16x96xf32> to vector<16x32xf32>
    %101 = vector.shape_cast %100 : vector<16x32xf32> to vector<2x8x32xf32>
    %102 = vector.extract_strided_slice %99 {offsets = [0, 32], sizes = [16, 32], strides = [1, 1]} : vector<16x96xf32> to vector<16x32xf32>
    %103 = vector.shape_cast %102 : vector<16x32xf32> to vector<2x8x32xf32>
    %104 = vector.extract_strided_slice %99 {offsets = [0, 64], sizes = [16, 32], strides = [1, 1]} : vector<16x96xf32> to vector<16x32xf32>
    %105 = vector.shape_cast %104 : vector<16x32xf32> to vector<2x8x32xf32>
    %106 = arith.truncf %101 : vector<2x8x32xf32> to vector<2x8x32xbf16>
    %cst_54 = arith.constant 0.000000e+00 : f32
    %107 = vector.broadcast %cst_54 : f32 to vector<2x8x32xf32>
    %108 = vector.broadcast %32 : vector<1x1x32xf32> to vector<2x8x32xf32>
    %109 = arith.mulf %103, %108 : vector<2x8x32xf32>
    %110 = arith.truncf %109 : vector<2x8x32xf32> to vector<2x8x32xbf16>
    "tpu.trace_start"() <{level = 10 : i32, message = "bqd,bkd->bqk"}> : () -> ()
    %cst_55 = arith.constant dense<0.000000e+00> : vector<2x8x8xf32>
    %111 = tpu.matmul %106, %110, %cst_55 {dimension_numbers = #tpu.dot_dimension_numbers<[2], [2], [1], [1], [0, 0, 0, 1, 1, 1], [0], [0]>} : vector<2x8x32xbf16>, vector<2x8x32xbf16>, vector<2x8x8xf32> -> vector<2x8x8xf32>
    "tpu.trace_stop"() : () -> ()
    %112 = vector.broadcast %21 : vector<2x8x1xf32> to vector<2x8x8xf32>
    %113 = arith.mulf %111, %112 : vector<2x8x8xf32>
    %114 = vector.broadcast %23 : vector<2x8x1xf32> to vector<2x8x8xf32>
    %115 = arith.addf %113, %114 : vector<2x8x8xf32>
    %cst_56 = arith.constant dense<0xFF800000> : vector<2x8xf32>
    %116 = vector.multi_reduction <maximumf>, %115, %cst_56 [2] : vector<2x8x8xf32> to vector<2x8xf32>
    %117 = vector.shape_cast %116 : vector<2x8xf32> to vector<2x8x1xf32>
    %118 = vector.broadcast %117 : vector<2x8x1xf32> to vector<2x8x8xf32>
    %119 = arith.subf %115, %118 : vector<2x8x8xf32>
    %120 = math.exp %119 : vector<2x8x8xf32>
    %cst_57 = arith.constant dense<0.000000e+00> : vector<2x8xf32>
    %121 = vector.multi_reduction <add>, %120, %cst_57 [2] : vector<2x8x8xf32> to vector<2x8xf32>
    %122 = vector.shape_cast %121 : vector<2x8xf32> to vector<2x8x1xf32>
    %123 = tpu.reciprocal %122 {approx = true} : vector<2x8x1xf32> -> vector<2x8x1xf32>
    %124 = vector.broadcast %123 : vector<2x8x1xf32> to vector<2x8x8xf32>
    %125 = arith.mulf %120, %124 : vector<2x8x8xf32>
    %126 = arith.truncf %125 : vector<2x8x8xf32> to vector<2x8x8xbf16>
    %127 = vector.broadcast %46 : vector<1x1x32xf32> to vector<2x8x32xf32>
    %128 = arith.mulf %105, %127 : vector<2x8x32xf32>
    %129 = arith.truncf %128 : vector<2x8x32xf32> to vector<2x8x32xbf16>
    "tpu.trace_start"() <{level = 10 : i32, message = "bqk,bkd->bqd"}> : () -> ()
    %cst_58 = arith.constant dense<0.000000e+00> : vector<2x8x32xf32>
    %130 = tpu.matmul %126, %129, %cst_58 {dimension_numbers = #tpu.dot_dimension_numbers<[2], [1], [1], [2], [0, 0, 0, 1, 1, 2], [0], [0]>} : vector<2x8x8xbf16>, vector<2x8x32xbf16>, vector<2x8x32xf32> -> vector<2x8x32xf32>
    "tpu.trace_stop"() : () -> ()
    %131 = arith.addf %107, %130 : vector<2x8x32xf32>
    %132 = vector.broadcast %39 : vector<1x1x32xf32> to vector<2x8x32xf32>
    %133 = arith.mulf %103, %132 : vector<2x8x32xf32>
    %134 = arith.truncf %133 : vector<2x8x32xf32> to vector<2x8x32xbf16>
    "tpu.trace_start"() <{level = 10 : i32, message = "bqd,bkd->bqk"}> : () -> ()
    %cst_59 = arith.constant dense<0.000000e+00> : vector<2x8x8xf32>
    %135 = tpu.matmul %106, %134, %cst_59 {dimension_numbers = #tpu.dot_dimension_numbers<[2], [2], [1], [1], [0, 0, 0, 1, 1, 1], [0], [0]>} : vector<2x8x32xbf16>, vector<2x8x32xbf16>, vector<2x8x8xf32> -> vector<2x8x8xf32>
    "tpu.trace_stop"() : () -> ()
    %136 = vector.broadcast %21 : vector<2x8x1xf32> to vector<2x8x8xf32>
    %137 = arith.mulf %135, %136 : vector<2x8x8xf32>
    %138 = vector.broadcast %23 : vector<2x8x1xf32> to vector<2x8x8xf32>
    %139 = arith.addf %137, %138 : vector<2x8x8xf32>
    %cst_60 = arith.constant dense<0xFF800000> : vector<2x8xf32>
    %140 = vector.multi_reduction <maximumf>, %139, %cst_60 [2] : vector<2x8x8xf32> to vector<2x8xf32>
    %141 = vector.shape_cast %140 : vector<2x8xf32> to vector<2x8x1xf32>
    %142 = vector.broadcast %141 : vector<2x8x1xf32> to vector<2x8x8xf32>
    %143 = arith.subf %139, %142 : vector<2x8x8xf32>
    %144 = math.exp %143 : vector<2x8x8xf32>
    %cst_61 = arith.constant dense<0.000000e+00> : vector<2x8xf32>
    %145 = vector.multi_reduction <add>, %144, %cst_61 [2] : vector<2x8x8xf32> to vector<2x8xf32>
    %146 = vector.shape_cast %145 : vector<2x8xf32> to vector<2x8x1xf32>
    %147 = tpu.reciprocal %146 {approx = true} : vector<2x8x1xf32> -> vector<2x8x1xf32>
    %148 = vector.broadcast %147 : vector<2x8x1xf32> to vector<2x8x8xf32>
    %149 = arith.mulf %144, %148 : vector<2x8x8xf32>
    %150 = arith.truncf %149 : vector<2x8x8xf32> to vector<2x8x8xbf16>
    %151 = vector.broadcast %53 : vector<1x1x32xf32> to vector<2x8x32xf32>
    %152 = arith.mulf %105, %151 : vector<2x8x32xf32>
    %153 = arith.truncf %152 : vector<2x8x32xf32> to vector<2x8x32xbf16>
    "tpu.trace_start"() <{level = 10 : i32, message = "bqk,bkd->bqd"}> : () -> ()
    %cst_62 = arith.constant dense<0.000000e+00> : vector<2x8x32xf32>
    %154 = tpu.matmul %150, %153, %cst_62 {dimension_numbers = #tpu.dot_dimension_numbers<[2], [1], [1], [2], [0, 0, 0, 1, 1, 2], [0], [0]>} : vector<2x8x8xbf16>, vector<2x8x32xbf16>, vector<2x8x32xf32> -> vector<2x8x32xf32>
    "tpu.trace_stop"() : () -> ()
    %155 = arith.addf %131, %154 : vector<2x8x32xf32>
    %156 = vector.shape_cast %155 : vector<2x8x32xf32> to vector<16x32xf32>
    %157 = arith.truncf %156 : vector<16x32xf32> to vector<16x32xbf16>
    %cst_63 = arith.constant dense<0.000000e+00> : vector<16x32xf32>
    %158 = tpu.matmul %157, %57, %cst_63 {dimension_numbers = #tpu.dot_dimension_numbers<[1], [0], [0], [1], [0, 0, 1, 1], [], []>} : vector<16x32xbf16>, vector<32x32xbf16>, vector<16x32xf32> -> vector<16x32xf32>
    %159 = arith.addf %14, %158 : vector<16x32xf32>
    %cst_64 = arith.constant dense<0.000000e+00> : vector<16xf32>
    %160 = vector.multi_reduction <add>, %159, %cst_64 [1] : vector<16x32xf32> to vector<16xf32>
    %161 = vector.shape_cast %160 : vector<16xf32> to vector<16x1xf32>
    %cst_65 = arith.constant 3.200000e+01 : f32
    %162 = vector.broadcast %cst_65 : f32 to vector<16x1xf32>
    %163 = arith.divf %161, %162 : vector<16x1xf32>
    %164 = vector.broadcast %163 : vector<16x1xf32> to vector<16x32xf32>
    %165 = arith.subf %159, %164 : vector<16x32xf32>
    %166 = arith.mulf %165, %165 : vector<16x32xf32>
    %cst_66 = arith.constant dense<0.000000e+00> : vector<16xf32>
    %167 = vector.multi_reduction <add>, %166, %cst_66 [1] : vector<16x32xf32> to vector<16xf32>
    %168 = vector.shape_cast %167 : vector<16xf32> to vector<16x1xf32>
    %cst_67 = arith.constant 3.200000e+01 : f32
    %169 = vector.broadcast %cst_67 : f32 to vector<16x1xf32>
    %170 = arith.divf %168, %169 : vector<16x1xf32>
    %cst_68 = arith.constant 9.99999974E-6 : f32
    %171 = vector.broadcast %cst_68 : f32 to vector<16x1xf32>
    %172 = arith.addf %170, %171 : vector<16x1xf32>
    %173 = math.rsqrt %172 : vector<16x1xf32>
    %174 = vector.broadcast %173 : vector<16x1xf32> to vector<16x32xf32>
    %175 = arith.mulf %165, %174 : vector<16x32xf32>
    %176 = vector.broadcast %63 : vector<1x32xf32> to vector<16x32xf32>
    %177 = arith.mulf %175, %176 : vector<16x32xf32>
    %178 = vector.broadcast %65 : vector<1x32xf32> to vector<16x32xf32>
    %179 = arith.addf %177, %178 : vector<16x32xf32>
    %cst_69 = arith.constant dense<0.000000e+00> : vector<16xf32>
    %180 = vector.multi_reduction <add>, %179, %cst_69 [1] : vector<16x32xf32> to vector<16xf32>
    %181 = vector.shape_cast %180 : vector<16xf32> to vector<16x1xf32>
    %cst_70 = arith.constant 3.200000e+01 : f32
    %182 = vector.broadcast %cst_70 : f32 to vector<16x1xf32>
    %183 = arith.divf %181, %182 : vector<16x1xf32>
    %184 = vector.broadcast %183 : vector<16x1xf32> to vector<16x32xf32>
    %185 = arith.subf %179, %184 : vector<16x32xf32>
    %186 = arith.mulf %185, %185 : vector<16x32xf32>
    %cst_71 = arith.constant dense<0.000000e+00> : vector<16xf32>
    %187 = vector.multi_reduction <add>, %186, %cst_71 [1] : vector<16x32xf32> to vector<16xf32>
    %188 = vector.shape_cast %187 : vector<16xf32> to vector<16x1xf32>
    %cst_72 = arith.constant 3.200000e+01 : f32
    %189 = vector.broadcast %cst_72 : f32 to vector<16x1xf32>
    %190 = arith.divf %188, %189 : vector<16x1xf32>
    %cst_73 = arith.constant 9.99999974E-6 : f32
    %191 = vector.broadcast %cst_73 : f32 to vector<16x1xf32>
    %192 = arith.addf %190, %191 : vector<16x1xf32>
    %193 = math.rsqrt %192 : vector<16x1xf32>
    %194 = vector.broadcast %193 : vector<16x1xf32> to vector<16x32xf32>
    %195 = arith.mulf %185, %194 : vector<16x32xf32>
    %196 = vector.broadcast %67 : vector<1x32xf32> to vector<16x32xf32>
    %197 = arith.mulf %195, %196 : vector<16x32xf32>
    %198 = vector.broadcast %69 : vector<1x32xf32> to vector<16x32xf32>
    %199 = arith.addf %197, %198 : vector<16x32xf32>
    %200 = arith.truncf %199 : vector<16x32xf32> to vector<16x32xbf16>
    %cst_74 = arith.constant dense<0.000000e+00> : vector<16x64xf32>
    %201 = tpu.matmul %200, %71, %cst_74 {dimension_numbers = #tpu.dot_dimension_numbers<[1], [0], [0], [1], [0, 0, 1, 1], [], []>} : vector<16x32xbf16>, vector<32x64xbf16>, vector<16x64xf32> -> vector<16x64xf32>
    %202 = vector.broadcast %73 : vector<1x64xf32> to vector<16x64xf32>
    %203 = arith.addf %201, %202 : vector<16x64xf32>
    %cst_75 = arith.constant 5.000000e-01 : f32
    %204 = vector.broadcast %cst_75 : f32 to vector<16x64xf32>
    %205 = arith.mulf %203, %204 : vector<16x64xf32>
    %cst_76 = arith.constant 0.707106769 : f32
    %206 = vector.broadcast %cst_76 : f32 to vector<16x64xf32>
    %207 = arith.mulf %203, %206 : vector<16x64xf32>
    %208 = math.erf %207 : vector<16x64xf32>
    %cst_77 = arith.constant 1.000000e+00 : f32
    %209 = vector.broadcast %cst_77 : f32 to vector<16x64xf32>
    %210 = arith.addf %209, %208 : vector<16x64xf32>
    %211 = arith.mulf %205, %210 : vector<16x64xf32>
    %212 = arith.truncf %211 : vector<16x64xf32> to vector<16x64xbf16>
    %cst_78 = arith.constant dense<0.000000e+00> : vector<16x32xf32>
    %213 = tpu.matmul %212, %75, %cst_78 {dimension_numbers = #tpu.dot_dimension_numbers<[1], [0], [0], [1], [0, 0, 1, 1], [], []>} : vector<16x64xbf16>, vector<64x32xbf16>, vector<16x32xf32> -> vector<16x32xf32>
    %214 = vector.broadcast %77 : vector<1x32xf32> to vector<16x32xf32>
    %215 = arith.addf %213, %214 : vector<16x32xf32>
    %216 = arith.addf %159, %215 : vector<16x32xf32>
    %c1 = arith.constant 1 : index
    %c0_79 = arith.constant 0 : index
    %c0_80 = arith.constant 0 : index
    %217 = vector.load %arg4[%c1, %c0_79, %c0_80] : memref<2x32x96xbf16, #tpu.memory_space<vmem>>, vector<1x32x96xbf16>
    %218 = vector.shape_cast %217 : vector<1x32x96xbf16> to vector<32x96xbf16>
    %c1_81 = arith.constant 1 : index
    %c0_82 = arith.constant 0 : index
    %c0_83 = arith.constant 0 : index
    %219 = vector.load %arg5[%c1_81, %c0_82, %c0_83] : memref<2x32x32xbf16, #tpu.memory_space<vmem>>, vector<1x32x32xbf16>
    %220 = vector.shape_cast %219 : vector<1x32x32xbf16> to vector<32x32xbf16>
    %c1_84 = arith.constant 1 : index
    %c0_85 = arith.constant 0 : index
    %c0_86 = arith.constant 0 : index
    %221 = vector.load %arg6[%c1_84, %c0_85, %c0_86] : memref<2x1x32xf32, #tpu.memory_space<vmem>>, vector<1x1x32xf32>
    %222 = vector.shape_cast %221 : vector<1x1x32xf32> to vector<1x32xf32>
    %c1_87 = arith.constant 1 : index
    %c0_88 = arith.constant 0 : index
    %c0_89 = arith.constant 0 : index
    %223 = vector.load %arg7[%c1_87, %c0_88, %c0_89] : memref<2x1x32xf32, #tpu.memory_space<vmem>>, vector<1x1x32xf32>
    %224 = vector.shape_cast %223 : vector<1x1x32xf32> to vector<1x32xf32>
    %c1_90 = arith.constant 1 : index
    %c0_91 = arith.constant 0 : index
    %c0_92 = arith.constant 0 : index
    %225 = vector.load %arg8[%c1_90, %c0_91, %c0_92] : memref<2x1x32xf32, #tpu.memory_space<vmem>>, vector<1x1x32xf32>
    %226 = vector.shape_cast %225 : vector<1x1x32xf32> to vector<1x32xf32>
    %c1_93 = arith.constant 1 : index
    %c0_94 = arith.constant 0 : index
    %c0_95 = arith.constant 0 : index
    %227 = vector.load %arg9[%c1_93, %c0_94, %c0_95] : memref<2x1x32xf32, #tpu.memory_space<vmem>>, vector<1x1x32xf32>
    %228 = vector.shape_cast %227 : vector<1x1x32xf32> to vector<1x32xf32>
    %c1_96 = arith.constant 1 : index
    %c0_97 = arith.constant 0 : index
    %c0_98 = arith.constant 0 : index
    %229 = vector.load %arg10[%c1_96, %c0_97, %c0_98] : memref<2x1x32xf32, #tpu.memory_space<vmem>>, vector<1x1x32xf32>
    %230 = vector.shape_cast %229 : vector<1x1x32xf32> to vector<1x32xf32>
    %c1_99 = arith.constant 1 : index
    %c0_100 = arith.constant 0 : index
    %c0_101 = arith.constant 0 : index
    %231 = vector.load %arg11[%c1_99, %c0_100, %c0_101] : memref<2x1x32xf32, #tpu.memory_space<vmem>>, vector<1x1x32xf32>
    %232 = vector.shape_cast %231 : vector<1x1x32xf32> to vector<1x32xf32>
    %c1_102 = arith.constant 1 : index
    %c0_103 = arith.constant 0 : index
    %c0_104 = arith.constant 0 : index
    %233 = vector.load %arg12[%c1_102, %c0_103, %c0_104] : memref<2x32x64xbf16, #tpu.memory_space<vmem>>, vector<1x32x64xbf16>
    %234 = vector.shape_cast %233 : vector<1x32x64xbf16> to vector<32x64xbf16>
    %c1_105 = arith.constant 1 : index
    %c0_106 = arith.constant 0 : index
    %c0_107 = arith.constant 0 : index
    %235 = vector.load %arg13[%c1_105, %c0_106, %c0_107] : memref<2x1x64xf32, #tpu.memory_space<vmem>>, vector<1x1x64xf32>
    %236 = vector.shape_cast %235 : vector<1x1x64xf32> to vector<1x64xf32>
    %c1_108 = arith.constant 1 : index
    %c0_109 = arith.constant 0 : index
    %c0_110 = arith.constant 0 : index
    %237 = vector.load %arg14[%c1_108, %c0_109, %c0_110] : memref<2x64x32xbf16, #tpu.memory_space<vmem>>, vector<1x64x32xbf16>
    %238 = vector.shape_cast %237 : vector<1x64x32xbf16> to vector<64x32xbf16>
    %c1_111 = arith.constant 1 : index
    %c0_112 = arith.constant 0 : index
    %c0_113 = arith.constant 0 : index
    %239 = vector.load %arg15[%c1_111, %c0_112, %c0_113] : memref<2x1x32xf32, #tpu.memory_space<vmem>>, vector<1x1x32xf32>
    %240 = vector.shape_cast %239 : vector<1x1x32xf32> to vector<1x32xf32>
    %cst_114 = arith.constant dense<0.000000e+00> : vector<16xf32>
    %241 = vector.multi_reduction <add>, %216, %cst_114 [1] : vector<16x32xf32> to vector<16xf32>
    %242 = vector.shape_cast %241 : vector<16xf32> to vector<16x1xf32>
    %cst_115 = arith.constant 3.200000e+01 : f32
    %243 = vector.broadcast %cst_115 : f32 to vector<16x1xf32>
    %244 = arith.divf %242, %243 : vector<16x1xf32>
    %245 = vector.broadcast %244 : vector<16x1xf32> to vector<16x32xf32>
    %246 = arith.subf %216, %245 : vector<16x32xf32>
    %247 = arith.mulf %246, %246 : vector<16x32xf32>
    %cst_116 = arith.constant dense<0.000000e+00> : vector<16xf32>
    %248 = vector.multi_reduction <add>, %247, %cst_116 [1] : vector<16x32xf32> to vector<16xf32>
    %249 = vector.shape_cast %248 : vector<16xf32> to vector<16x1xf32>
    %cst_117 = arith.constant 3.200000e+01 : f32
    %250 = vector.broadcast %cst_117 : f32 to vector<16x1xf32>
    %251 = arith.divf %249, %250 : vector<16x1xf32>
    %cst_118 = arith.constant 9.99999974E-6 : f32
    %252 = vector.broadcast %cst_118 : f32 to vector<16x1xf32>
    %253 = arith.addf %251, %252 : vector<16x1xf32>
    %254 = math.rsqrt %253 : vector<16x1xf32>
    %255 = vector.broadcast %254 : vector<16x1xf32> to vector<16x32xf32>
    %256 = arith.mulf %246, %255 : vector<16x32xf32>
    %257 = vector.broadcast %222 : vector<1x32xf32> to vector<16x32xf32>
    %258 = arith.mulf %256, %257 : vector<16x32xf32>
    %259 = vector.broadcast %224 : vector<1x32xf32> to vector<16x32xf32>
    %260 = arith.addf %258, %259 : vector<16x32xf32>
    %261 = arith.truncf %260 : vector<16x32xf32> to vector<16x32xbf16>
    %cst_119 = arith.constant dense<0.000000e+00> : vector<16x96xf32>
    %262 = tpu.matmul %261, %218, %cst_119 {dimension_numbers = #tpu.dot_dimension_numbers<[1], [0], [0], [1], [0, 0, 1, 1], [], []>} : vector<16x32xbf16>, vector<32x96xbf16>, vector<16x96xf32> -> vector<16x96xf32>
    %263 = vector.extract_strided_slice %262 {offsets = [0, 0], sizes = [16, 32], strides = [1, 1]} : vector<16x96xf32> to vector<16x32xf32>
    %264 = vector.shape_cast %263 : vector<16x32xf32> to vector<2x8x32xf32>
    %265 = vector.extract_strided_slice %262 {offsets = [0, 32], sizes = [16, 32], strides = [1, 1]} : vector<16x96xf32> to vector<16x32xf32>
    %266 = vector.shape_cast %265 : vector<16x32xf32> to vector<2x8x32xf32>
    %267 = vector.extract_strided_slice %262 {offsets = [0, 64], sizes = [16, 32], strides = [1, 1]} : vector<16x96xf32> to vector<16x32xf32>
    %268 = vector.shape_cast %267 : vector<16x32xf32> to vector<2x8x32xf32>
    %269 = arith.truncf %264 : vector<2x8x32xf32> to vector<2x8x32xbf16>
    %cst_120 = arith.constant 0.000000e+00 : f32
    %270 = vector.broadcast %cst_120 : f32 to vector<2x8x32xf32>
    %271 = vector.broadcast %32 : vector<1x1x32xf32> to vector<2x8x32xf32>
    %272 = arith.mulf %266, %271 : vector<2x8x32xf32>
    %273 = arith.truncf %272 : vector<2x8x32xf32> to vector<2x8x32xbf16>
    "tpu.trace_start"() <{level = 10 : i32, message = "bqd,bkd->bqk"}> : () -> ()
    %cst_121 = arith.constant dense<0.000000e+00> : vector<2x8x8xf32>
    %274 = tpu.matmul %269, %273, %cst_121 {dimension_numbers = #tpu.dot_dimension_numbers<[2], [2], [1], [1], [0, 0, 0, 1, 1, 1], [0], [0]>} : vector<2x8x32xbf16>, vector<2x8x32xbf16>, vector<2x8x8xf32> -> vector<2x8x8xf32>
    "tpu.trace_stop"() : () -> ()
    %275 = vector.broadcast %21 : vector<2x8x1xf32> to vector<2x8x8xf32>
    %276 = arith.mulf %274, %275 : vector<2x8x8xf32>
    %277 = vector.broadcast %23 : vector<2x8x1xf32> to vector<2x8x8xf32>
    %278 = arith.addf %276, %277 : vector<2x8x8xf32>
    %cst_122 = arith.constant dense<0xFF800000> : vector<2x8xf32>
    %279 = vector.multi_reduction <maximumf>, %278, %cst_122 [2] : vector<2x8x8xf32> to vector<2x8xf32>
    %280 = vector.shape_cast %279 : vector<2x8xf32> to vector<2x8x1xf32>
    %281 = vector.broadcast %280 : vector<2x8x1xf32> to vector<2x8x8xf32>
    %282 = arith.subf %278, %281 : vector<2x8x8xf32>
    %283 = math.exp %282 : vector<2x8x8xf32>
    %cst_123 = arith.constant dense<0.000000e+00> : vector<2x8xf32>
    %284 = vector.multi_reduction <add>, %283, %cst_123 [2] : vector<2x8x8xf32> to vector<2x8xf32>
    %285 = vector.shape_cast %284 : vector<2x8xf32> to vector<2x8x1xf32>
    %286 = tpu.reciprocal %285 {approx = true} : vector<2x8x1xf32> -> vector<2x8x1xf32>
    %287 = vector.broadcast %286 : vector<2x8x1xf32> to vector<2x8x8xf32>
    %288 = arith.mulf %283, %287 : vector<2x8x8xf32>
    %289 = arith.truncf %288 : vector<2x8x8xf32> to vector<2x8x8xbf16>
    %290 = vector.broadcast %46 : vector<1x1x32xf32> to vector<2x8x32xf32>
    %291 = arith.mulf %268, %290 : vector<2x8x32xf32>
    %292 = arith.truncf %291 : vector<2x8x32xf32> to vector<2x8x32xbf16>
    "tpu.trace_start"() <{level = 10 : i32, message = "bqk,bkd->bqd"}> : () -> ()
    %cst_124 = arith.constant dense<0.000000e+00> : vector<2x8x32xf32>
    %293 = tpu.matmul %289, %292, %cst_124 {dimension_numbers = #tpu.dot_dimension_numbers<[2], [1], [1], [2], [0, 0, 0, 1, 1, 2], [0], [0]>} : vector<2x8x8xbf16>, vector<2x8x32xbf16>, vector<2x8x32xf32> -> vector<2x8x32xf32>
    "tpu.trace_stop"() : () -> ()
    %294 = arith.addf %270, %293 : vector<2x8x32xf32>
    %295 = vector.broadcast %39 : vector<1x1x32xf32> to vector<2x8x32xf32>
    %296 = arith.mulf %266, %295 : vector<2x8x32xf32>
    %297 = arith.truncf %296 : vector<2x8x32xf32> to vector<2x8x32xbf16>
    "tpu.trace_start"() <{level = 10 : i32, message = "bqd,bkd->bqk"}> : () -> ()
    %cst_125 = arith.constant dense<0.000000e+00> : vector<2x8x8xf32>
    %298 = tpu.matmul %269, %297, %cst_125 {dimension_numbers = #tpu.dot_dimension_numbers<[2], [2], [1], [1], [0, 0, 0, 1, 1, 1], [0], [0]>} : vector<2x8x32xbf16>, vector<2x8x32xbf16>, vector<2x8x8xf32> -> vector<2x8x8xf32>
    "tpu.trace_stop"() : () -> ()
    %299 = vector.broadcast %21 : vector<2x8x1xf32> to vector<2x8x8xf32>
    %300 = arith.mulf %298, %299 : vector<2x8x8xf32>
    %301 = vector.broadcast %23 : vector<2x8x1xf32> to vector<2x8x8xf32>
    %302 = arith.addf %300, %301 : vector<2x8x8xf32>
    %cst_126 = arith.constant dense<0xFF800000> : vector<2x8xf32>
    %303 = vector.multi_reduction <maximumf>, %302, %cst_126 [2] : vector<2x8x8xf32> to vector<2x8xf32>
    %304 = vector.shape_cast %303 : vector<2x8xf32> to vector<2x8x1xf32>
    %305 = vector.broadcast %304 : vector<2x8x1xf32> to vector<2x8x8xf32>
    %306 = arith.subf %302, %305 : vector<2x8x8xf32>
    %307 = math.exp %306 : vector<2x8x8xf32>
    %cst_127 = arith.constant dense<0.000000e+00> : vector<2x8xf32>
    %308 = vector.multi_reduction <add>, %307, %cst_127 [2] : vector<2x8x8xf32> to vector<2x8xf32>
    %309 = vector.shape_cast %308 : vector<2x8xf32> to vector<2x8x1xf32>
    %310 = tpu.reciprocal %309 {approx = true} : vector<2x8x1xf32> -> vector<2x8x1xf32>
    %311 = vector.broadcast %310 : vector<2x8x1xf32> to vector<2x8x8xf32>
    %312 = arith.mulf %307, %311 : vector<2x8x8xf32>
    %313 = arith.truncf %312 : vector<2x8x8xf32> to vector<2x8x8xbf16>
    %314 = vector.broadcast %53 : vector<1x1x32xf32> to vector<2x8x32xf32>
    %315 = arith.mulf %268, %314 : vector<2x8x32xf32>
    %316 = arith.truncf %315 : vector<2x8x32xf32> to vector<2x8x32xbf16>
    "tpu.trace_start"() <{level = 10 : i32, message = "bqk,bkd->bqd"}> : () -> ()
    %cst_128 = arith.constant dense<0.000000e+00> : vector<2x8x32xf32>
    %317 = tpu.matmul %313, %316, %cst_128 {dimension_numbers = #tpu.dot_dimension_numbers<[2], [1], [1], [2], [0, 0, 0, 1, 1, 2], [0], [0]>} : vector<2x8x8xbf16>, vector<2x8x32xbf16>, vector<2x8x32xf32> -> vector<2x8x32xf32>
    "tpu.trace_stop"() : () -> ()
    %318 = arith.addf %294, %317 : vector<2x8x32xf32>
    %319 = vector.shape_cast %318 : vector<2x8x32xf32> to vector<16x32xf32>
    %320 = arith.truncf %319 : vector<16x32xf32> to vector<16x32xbf16>
    %cst_129 = arith.constant dense<0.000000e+00> : vector<16x32xf32>
    %321 = tpu.matmul %320, %220, %cst_129 {dimension_numbers = #tpu.dot_dimension_numbers<[1], [0], [0], [1], [0, 0, 1, 1], [], []>} : vector<16x32xbf16>, vector<32x32xbf16>, vector<16x32xf32> -> vector<16x32xf32>
    %322 = arith.addf %216, %321 : vector<16x32xf32>
    %cst_130 = arith.constant dense<0.000000e+00> : vector<16xf32>
    %323 = vector.multi_reduction <add>, %322, %cst_130 [1] : vector<16x32xf32> to vector<16xf32>
    %324 = vector.shape_cast %323 : vector<16xf32> to vector<16x1xf32>
    %cst_131 = arith.constant 3.200000e+01 : f32
    %325 = vector.broadcast %cst_131 : f32 to vector<16x1xf32>
    %326 = arith.divf %324, %325 : vector<16x1xf32>
    %327 = vector.broadcast %326 : vector<16x1xf32> to vector<16x32xf32>
    %328 = arith.subf %322, %327 : vector<16x32xf32>
    %329 = arith.mulf %328, %328 : vector<16x32xf32>
    %cst_132 = arith.constant dense<0.000000e+00> : vector<16xf32>
    %330 = vector.multi_reduction <add>, %329, %cst_132 [1] : vector<16x32xf32> to vector<16xf32>
    %331 = vector.shape_cast %330 : vector<16xf32> to vector<16x1xf32>
    %cst_133 = arith.constant 3.200000e+01 : f32
    %332 = vector.broadcast %cst_133 : f32 to vector<16x1xf32>
    %333 = arith.divf %331, %332 : vector<16x1xf32>
    %cst_134 = arith.constant 9.99999974E-6 : f32
    %334 = vector.broadcast %cst_134 : f32 to vector<16x1xf32>
    %335 = arith.addf %333, %334 : vector<16x1xf32>
    %336 = math.rsqrt %335 : vector<16x1xf32>
    %337 = vector.broadcast %336 : vector<16x1xf32> to vector<16x32xf32>
    %338 = arith.mulf %328, %337 : vector<16x32xf32>
    %339 = vector.broadcast %226 : vector<1x32xf32> to vector<16x32xf32>
    %340 = arith.mulf %338, %339 : vector<16x32xf32>
    %341 = vector.broadcast %228 : vector<1x32xf32> to vector<16x32xf32>
    %342 = arith.addf %340, %341 : vector<16x32xf32>
    %cst_135 = arith.constant dense<0.000000e+00> : vector<16xf32>
    %343 = vector.multi_reduction <add>, %342, %cst_135 [1] : vector<16x32xf32> to vector<16xf32>
    %344 = vector.shape_cast %343 : vector<16xf32> to vector<16x1xf32>
    %cst_136 = arith.constant 3.200000e+01 : f32
    %345 = vector.broadcast %cst_136 : f32 to vector<16x1xf32>
    %346 = arith.divf %344, %345 : vector<16x1xf32>
    %347 = vector.broadcast %346 : vector<16x1xf32> to vector<16x32xf32>
    %348 = arith.subf %342, %347 : vector<16x32xf32>
    %349 = arith.mulf %348, %348 : vector<16x32xf32>
    %cst_137 = arith.constant dense<0.000000e+00> : vector<16xf32>
    %350 = vector.multi_reduction <add>, %349, %cst_137 [1] : vector<16x32xf32> to vector<16xf32>
    %351 = vector.shape_cast %350 : vector<16xf32> to vector<16x1xf32>
    %cst_138 = arith.constant 3.200000e+01 : f32
    %352 = vector.broadcast %cst_138 : f32 to vector<16x1xf32>
    %353 = arith.divf %351, %352 : vector<16x1xf32>
    %cst_139 = arith.constant 9.99999974E-6 : f32
    %354 = vector.broadcast %cst_139 : f32 to vector<16x1xf32>
    %355 = arith.addf %353, %354 : vector<16x1xf32>
    %356 = math.rsqrt %355 : vector<16x1xf32>
    %357 = vector.broadcast %356 : vector<16x1xf32> to vector<16x32xf32>
    %358 = arith.mulf %348, %357 : vector<16x32xf32>
    %359 = vector.broadcast %230 : vector<1x32xf32> to vector<16x32xf32>
    %360 = arith.mulf %358, %359 : vector<16x32xf32>
    %361 = vector.broadcast %232 : vector<1x32xf32> to vector<16x32xf32>
    %362 = arith.addf %360, %361 : vector<16x32xf32>
    %363 = arith.truncf %362 : vector<16x32xf32> to vector<16x32xbf16>
    %cst_140 = arith.constant dense<0.000000e+00> : vector<16x64xf32>
    %364 = tpu.matmul %363, %234, %cst_140 {dimension_numbers = #tpu.dot_dimension_numbers<[1], [0], [0], [1], [0, 0, 1, 1], [], []>} : vector<16x32xbf16>, vector<32x64xbf16>, vector<16x64xf32> -> vector<16x64xf32>
    %365 = vector.broadcast %236 : vector<1x64xf32> to vector<16x64xf32>
    %366 = arith.addf %364, %365 : vector<16x64xf32>
    %cst_141 = arith.constant 5.000000e-01 : f32
    %367 = vector.broadcast %cst_141 : f32 to vector<16x64xf32>
    %368 = arith.mulf %366, %367 : vector<16x64xf32>
    %cst_142 = arith.constant 0.707106769 : f32
    %369 = vector.broadcast %cst_142 : f32 to vector<16x64xf32>
    %370 = arith.mulf %366, %369 : vector<16x64xf32>
    %371 = math.erf %370 : vector<16x64xf32>
    %cst_143 = arith.constant 1.000000e+00 : f32
    %372 = vector.broadcast %cst_143 : f32 to vector<16x64xf32>
    %373 = arith.addf %372, %371 : vector<16x64xf32>
    %374 = arith.mulf %368, %373 : vector<16x64xf32>
    %375 = arith.truncf %374 : vector<16x64xf32> to vector<16x64xbf16>
    %cst_144 = arith.constant dense<0.000000e+00> : vector<16x32xf32>
    %376 = tpu.matmul %375, %238, %cst_144 {dimension_numbers = #tpu.dot_dimension_numbers<[1], [0], [0], [1], [0, 0, 1, 1], [], []>} : vector<16x64xbf16>, vector<64x32xbf16>, vector<16x32xf32> -> vector<16x32xf32>
    %377 = vector.broadcast %240 : vector<1x32xf32> to vector<16x32xf32>
    %378 = arith.addf %376, %377 : vector<16x32xf32>
    %379 = arith.addf %322, %378 : vector<16x32xf32>
    %380 = vector.shape_cast %379 : vector<16x32xf32> to vector<2x8x32xf32>
    %381 = vector.broadcast %21 : vector<2x8x1xf32> to vector<2x8x32xf32>
    %382 = arith.mulf %380, %381 : vector<2x8x32xf32>
    %cst_145 = arith.constant dense<0.000000e+00> : vector<2x32xf32>
    %383 = vector.multi_reduction <add>, %382, %cst_145 [1] : vector<2x8x32xf32> to vector<2x32xf32>
    %cst_146 = arith.constant 1.250000e-01 : f32
    %384 = vector.broadcast %cst_146 : f32 to vector<2x32xf32>
    %385 = arith.mulf %383, %384 : vector<2x32xf32>
    %c0_147 = arith.constant 0 : index
    %c0_148 = arith.constant 0 : index
    %386 = vector.load %arg16[%c0_147, %c0_148] : memref<1x32xf32, #tpu.memory_space<vmem>>, vector<1x32xf32>
    %c0_149 = arith.constant 0 : index
    %c0_150 = arith.constant 0 : index
    %387 = vector.load %arg17[%c0_149, %c0_150] : memref<1x32xf32, #tpu.memory_space<vmem>>, vector<1x32xf32>
    %cst_151 = arith.constant dense<0.000000e+00> : vector<2xf32>
    %388 = vector.multi_reduction <add>, %385, %cst_151 [1] : vector<2x32xf32> to vector<2xf32>
    %389 = vector.shape_cast %388 : vector<2xf32> to vector<2x1xf32>
    %cst_152 = arith.constant 3.200000e+01 : f32
    %390 = vector.broadcast %cst_152 : f32 to vector<2x1xf32>
    %391 = arith.divf %389, %390 : vector<2x1xf32>
    %392 = vector.broadcast %391 : vector<2x1xf32> to vector<2x32xf32>
    %393 = arith.subf %385, %392 : vector<2x32xf32>
    %394 = arith.mulf %393, %393 : vector<2x32xf32>
    %cst_153 = arith.constant dense<0.000000e+00> : vector<2xf32>
    %395 = vector.multi_reduction <add>, %394, %cst_153 [1] : vector<2x32xf32> to vector<2xf32>
    %396 = vector.shape_cast %395 : vector<2xf32> to vector<2x1xf32>
    %cst_154 = arith.constant 3.200000e+01 : f32
    %397 = vector.broadcast %cst_154 : f32 to vector<2x1xf32>
    %398 = arith.divf %396, %397 : vector<2x1xf32>
    %cst_155 = arith.constant 9.99999974E-6 : f32
    %399 = vector.broadcast %cst_155 : f32 to vector<2x1xf32>
    %400 = arith.addf %398, %399 : vector<2x1xf32>
    %401 = math.rsqrt %400 : vector<2x1xf32>
    %402 = vector.broadcast %401 : vector<2x1xf32> to vector<2x32xf32>
    %403 = arith.mulf %393, %402 : vector<2x32xf32>
    %404 = vector.broadcast %386 : vector<1x32xf32> to vector<2x32xf32>
    %405 = arith.mulf %403, %404 : vector<2x32xf32>
    %406 = vector.broadcast %387 : vector<1x32xf32> to vector<2x32xf32>
    %407 = arith.addf %405, %406 : vector<2x32xf32>
    %c0_156 = arith.constant 0 : index
    %c0_157 = arith.constant 0 : index
    %408 = vector.load %arg18[%c0_156, %c0_157] : memref<32x6xf32, #tpu.memory_space<vmem>>, vector<32x6xf32>
    %cst_158 = arith.constant dense<0.000000e+00> : vector<2x6xf32>
    %409 = tpu.matmul %407, %408, %cst_158 {dimension_numbers = #tpu.dot_dimension_numbers<[1], [0], [0], [1], [0, 0, 1, 1], [], []>} : vector<2x32xf32>, vector<32x6xf32>, vector<2x6xf32> -> vector<2x6xf32>
    %c0_159 = arith.constant 0 : index
    %c0_160 = arith.constant 0 : index
    %410 = vector.load %arg19[%c0_159, %c0_160] : memref<1x6xf32, #tpu.memory_space<vmem>>, vector<1x6xf32>
    %411 = vector.broadcast %410 : vector<1x6xf32> to vector<2x6xf32>
    %412 = arith.addf %409, %411 : vector<2x6xf32>
    %cst_161 = arith.constant 0.000000e+00 : f32
    %413 = vector.broadcast %cst_161 : f32 to vector<2x6xf32>
    %414 = arith.subf %413, %412 : vector<2x6xf32>
    %415 = math.exp %414 : vector<2x6xf32>
    %cst_162 = arith.constant 1.000000e+00 : f32
    %416 = vector.broadcast %cst_162 : f32 to vector<2x6xf32>
    %417 = arith.addf %416, %415 : vector<2x6xf32>
    %cst_163 = arith.constant 1.000000e+00 : f32
    %418 = vector.broadcast %cst_163 : f32 to vector<2x6xf32>
    %419 = arith.divf %418, %417 : vector<2x6xf32>
    %c0_164 = arith.constant 0 : index
    %c0_165 = arith.constant 0 : index
    %420 = vector.load %arg20[%c0_164, %c0_165] : memref<2x6xf32, #tpu.memory_space<vmem>>, vector<2x6xf32>
    tpu.vector_store %arg20[%c0_164, %c0_165], %419 {strides = array<i32>} : memref<2x6xf32, #tpu.memory_space<vmem>>, vector<2x6xf32>,
    return
  }
  func.func @transform_0(%arg0: i32) -> (i32, i32) {
    %c0_i32 = arith.constant 0 : i32
    %c0_i32_0 = arith.constant 0 : i32
    return %arg0, %c0_i32 : i32, i32
  }
  func.func @transform_1(%arg0: i32) -> (i32, i32) {
    %c0_i32 = arith.constant 0 : i32
    %c0_i32_0 = arith.constant 0 : i32
    %c0_i32_1 = arith.constant 0 : i32
    return %c0_i32, %c0_i32_0 : i32, i32
  }
  func.func @transform_2(%arg0: i32) -> (i32, i32) {
    %c0_i32 = arith.constant 0 : i32
    %c0_i32_0 = arith.constant 0 : i32
    %c0_i32_1 = arith.constant 0 : i32
    return %c0_i32, %c0_i32_0 : i32, i32
  }
  func.func @transform_3(%arg0: i32) -> (i32, i32, i32) {
    %c0_i32 = arith.constant 0 : i32
    %c0_i32_0 = arith.constant 0 : i32
    %c0_i32_1 = arith.constant 0 : i32
    %c0_i32_2 = arith.constant 0 : i32
    return %c0_i32, %c0_i32_0, %c0_i32_1 : i32, i32, i32
  }
  func.func @transform_4(%arg0: i32) -> (i32, i32, i32) {
    %c0_i32 = arith.constant 0 : i32
    %c0_i32_0 = arith.constant 0 : i32
    %c0_i32_1 = arith.constant 0 : i32
    %c0_i32_2 = arith.constant 0 : i32
    return %c0_i32, %c0_i32_0, %c0_i32_1 : i32, i32, i32
  }
  func.func @transform_5(%arg0: i32) -> (i32, i32, i32) {
    %c0_i32 = arith.constant 0 : i32
    %c0_i32_0 = arith.constant 0 : i32
    %c0_i32_1 = arith.constant 0 : i32
    %c0_i32_2 = arith.constant 0 : i32
    return %c0_i32, %c0_i32_0, %c0_i32_1 : i32, i32, i32
  }
  func.func @transform_6(%arg0: i32) -> (i32, i32, i32) {
    %c0_i32 = arith.constant 0 : i32
    %c0_i32_0 = arith.constant 0 : i32
    %c0_i32_1 = arith.constant 0 : i32
    %c0_i32_2 = arith.constant 0 : i32
    return %c0_i32, %c0_i32_0, %c0_i32_1 : i32, i32, i32
  }
  func.func @transform_7(%arg0: i32) -> (i32, i32, i32) {
    %c0_i32 = arith.constant 0 : i32
    %c0_i32_0 = arith.constant 0 : i32
    %c0_i32_1 = arith.constant 0 : i32
    %c0_i32_2 = arith.constant 0 : i32
    return %c0_i32, %c0_i32_0, %c0_i32_1 : i32, i32, i32
  }
  func.func @transform_8(%arg0: i32) -> (i32, i32, i32) {
    %c0_i32 = arith.constant 0 : i32
    %c0_i32_0 = arith.constant 0 : i32
    %c0_i32_1 = arith.constant 0 : i32
    %c0_i32_2 = arith.constant 0 : i32
    return %c0_i32, %c0_i32_0, %c0_i32_1 : i32, i32, i32
  }
  func.func @transform_9(%arg0: i32) -> (i32, i32, i32) {
    %c0_i32 = arith.constant 0 : i32
    %c0_i32_0 = arith.constant 0 : i32
    %c0_i32_1 = arith.constant 0 : i32
    %c0_i32_2 = arith.constant 0 : i32
    return %c0_i32, %c0_i32_0, %c0_i32_1 : i32, i32, i32
  }
  func.func @transform_10(%arg0: i32) -> (i32, i32, i32) {
    %c0_i32 = arith.constant 0 : i32
    %c0_i32_0 = arith.constant 0 : i32
    %c0_i32_1 = arith.constant 0 : i32
    %c0_i32_2 = arith.constant 0 : i32
    return %c0_i32, %c0_i32_0, %c0_i32_1 : i32, i32, i32
  }
  func.func @transform_11(%arg0: i32) -> (i32, i32, i32) {
    %c0_i32 = arith.constant 0 : i32
    %c0_i32_0 = arith.constant 0 : i32
    %c0_i32_1 = arith.constant 0 : i32
    %c0_i32_2 = arith.constant 0 : i32
    return %c0_i32, %c0_i32_0, %c0_i32_1 : i32, i32, i32
  }
  func.func @transform_12(%arg0: i32) -> (i32, i32, i32) {
    %c0_i32 = arith.constant 0 : i32
    %c0_i32_0 = arith.constant 0 : i32
    %c0_i32_1 = arith.constant 0 : i32
    %c0_i32_2 = arith.constant 0 : i32
    return %c0_i32, %c0_i32_0, %c0_i32_1 : i32, i32, i32
  }
  func.func @transform_13(%arg0: i32) -> (i32, i32, i32) {
    %c0_i32 = arith.constant 0 : i32
    %c0_i32_0 = arith.constant 0 : i32
    %c0_i32_1 = arith.constant 0 : i32
    %c0_i32_2 = arith.constant 0 : i32
    return %c0_i32, %c0_i32_0, %c0_i32_1 : i32, i32, i32
  }
  func.func @transform_14(%arg0: i32) -> (i32, i32, i32) {
    %c0_i32 = arith.constant 0 : i32
    %c0_i32_0 = arith.constant 0 : i32
    %c0_i32_1 = arith.constant 0 : i32
    %c0_i32_2 = arith.constant 0 : i32
    return %c0_i32, %c0_i32_0, %c0_i32_1 : i32, i32, i32
  }
  func.func @transform_15(%arg0: i32) -> (i32, i32) {
    %c0_i32 = arith.constant 0 : i32
    %c0_i32_0 = arith.constant 0 : i32
    %c0_i32_1 = arith.constant 0 : i32
    return %c0_i32, %c0_i32_0 : i32, i32
  }
  func.func @transform_16(%arg0: i32) -> (i32, i32) {
    %c0_i32 = arith.constant 0 : i32
    %c0_i32_0 = arith.constant 0 : i32
    %c0_i32_1 = arith.constant 0 : i32
    return %c0_i32, %c0_i32_0 : i32, i32
  }
  func.func @transform_17(%arg0: i32) -> (i32, i32) {
    %c0_i32 = arith.constant 0 : i32
    %c0_i32_0 = arith.constant 0 : i32
    %c0_i32_1 = arith.constant 0 : i32
    return %c0_i32, %c0_i32_0 : i32, i32
  }
  func.func @transform_18(%arg0: i32) -> (i32, i32) {
    %c0_i32 = arith.constant 0 : i32
    %c0_i32_0 = arith.constant 0 : i32
    %c0_i32_1 = arith.constant 0 : i32
    return %c0_i32, %c0_i32_0 : i32, i32
  }
  func.func @transform_19(%arg0: i32) -> (i32, i32) {
    %c0_i32 = arith.constant 0 : i32
    %c0_i32_0 = arith.constant 0 : i32
    return %arg0, %c0_i32 : i32, i32
  }
}

</mosaic_0001>

<bundles_post_ra>
// kernel: tpu_custom_call.1
= control target key start
LH: loop header
LB: loop body
LE: loop exit
PB: predicated region body
PF: predicated region fallthrough
CT: control target
= control target key end

     0   :  { %s3270_s0 = inlined_call_operand.vmem [shape: s32[16,1], index: 0, kind: input, shape index: {}]   ;;  %s3271_s1 = inlined_call_operand.vmem [shape: f32[8,32], index: 1, kind: input, shape index: {}]   ;;  %s3272_s2 = inlined_call_operand.vmem [shape: bf16[32,32], index: 2, kind: input, shape index: {}]   ;;  %s3273_s3 = inlined_call_operand.vmem [shape: bf16[2,32,96], index: 3, kind: input, shape index: {}]   ;;  %s3274_s4 = inlined_call_operand.vmem [shape: bf16[2,32,32], index: 4, kind: input, shape index: {}]   ;;  %s3275_s5 = inlined_call_operand.vmem [shape: f32[2,1,32], index: 5, kind: input, shape index: {}]   ;;  %s3276_s6 = inlined_call_operand.hbm [shape: f32[2,1,32], index: 6, kind: input, shape index: {}]   ;;  %s3277_s7 = inlined_call_operand.vmem [shape: f32[2,1,32], index: 7, kind: input, shape index: {}]   ;;  %s3278_s8 = inlined_call_operand.vmem [shape: f32[2,1,32], index: 8, kind: input, shape index: {}]   ;;  %s3279_s9 = inlined_call_operand.vmem [shape: f32[2,1,32], index: 9, kind: input, shape index: {}]   ;;  %s3280_s10 = inlined_call_operand.vmem [shape: f32[2,1,32], index: 10, kind: input, shape index: {}]   ;;  %s3281_s11 = inlined_call_operand.vmem [shape: bf16[2,32,64], index: 11, kind: input, shape index: {}]   ;;  %s3282_s12 = inlined_call_operand.vmem [shape: f32[2,1,64], index: 12, kind: input, shape index: {}]   ;;  %s3283_s13 = inlined_call_operand.vmem [shape: bf16[2,64,32], index: 13, kind: input, shape index: {}]   ;;  %s3284_s14 = inlined_call_operand.vmem [shape: f32[2,1,32], index: 14, kind: input, shape index: {}]   ;;  %s3285_s15 = inlined_call_operand.vmem [shape: f32[1,32], index: 15, kind: input, shape index: {}]   ;;  %s3286_s16 = inlined_call_operand.vmem [shape: f32[1,32], index: 16, kind: input, shape index: {}]   ;;  %s3287_s17 = inlined_call_operand.vmem [shape: f32[32,6], index: 17, kind: input, shape index: {}]   ;;  %s3288_s18 = inlined_call_operand.vmem [shape: f32[1,6], index: 18, kind: input, shape index: {}]   ;;  %s3289_s19 = inlined_call_operand.hbm [shape: f32[2,6], index: 19, kind: output, shape index: {}]  }
   0x1   :  { %3293 = sst [smem:[#allocation8_spill]] %s3270_s0 }
   0x2   :  { %3294 = sst [smem:[#allocation9_spill]] %s3271_s1 }
   0x3   :  { %3295 = sst [smem:[#allocation10_spill]] %s3272_s2 }
   0x4   :  { %3296 = sst [smem:[#allocation11_spill]] %s3273_s3 }
   0x5   :  { %24 = vsyncpa [#allocation3], 0 }
   0x6   :  { %25 = vsyncpa [#allocation4], 0  ;;  %s2673_s0 = smov [#allocation2]  }
   0x7   :  { %s43_s30 = sshll.u32 %s2673_s0, 4  ;;  %s44_s30 = int_to_ptr.vmem [resolvable:$true] %s43_s30 }
   0x8   :  { %s2637_s20 = scalar_lea.vmem %s44_s30, 32  ;;  %p2642_p1 = scmp.lt.s32.totalorder %s44_s30, %s44_s30 }
   0x9   :  { %p2638_p0 = scmp.ne.s32.totalorder %s44_s30, %s2637_s20  ;;  %p2643_p2 = scmp.lt.s32.totalorder %s2637_s20, %s2637_s20 }
   0xb   :  { %p2644_p3 = por %p2643_p2, %p2642_p1 }
   0xd   :  { %p2645_p4 = pnand %p2644_p3, %p2638_p0 }
   0xf   :  { %2648 = shalt.err (!%p2645_p4)
}
  0x10   :  { %s2674_s21 = smov 16   ;;  %s2675_s1 = smov 1  }
  0x11   :  { %49 = dma.hbm_to_vmem [thread:$0]  %s3276_s6, 32, %s44_s30, [#allocation3], %s2674_s21, %s2674_s21, %s2675_s1  }
  0x12   :  { %2669 = dma.done.wait [#allocation3], 32  }
  0x13   :  { %2670 = vsyncadd [#allocation3], 4294967264  ;;  %v2676_v0 = vmov 0   ;;  %v2677_v1 = vmov 0.0   ;;  %s3297_s25 = sld [smem:[#allocation8_spill]]  ;;  %vm2678_vm0 = vmmov 0   ;;  %v80_v6 = vlaneseq }
  0x14   :  { %2535 = vset.pattern.permute.xlu0 %v2676_v0  ;;  %2338 = vmatprep.subr.bf16.mxu0 %v2677_v1  ;;  %s3298_s6 = sld [smem:[#allocation10_spill]]  ;;  %vm111_vm3 = vcmask 261120   ;;  %v2179_v44 = vld [vmem:[%s3275_s5] ss:$0 sm:$0xff]  ;;  %vm439_vm10 = vcmask 64512   ;;  %s2681_s27 = smov 64  }
  0x15   :  { %2346 = vmatprep.subr.bf16.mxu1 %v2677_v1  ;;  %2536 = vset.pattern.permute.xlu1 %v2676_v0  ;;  %v81_v7 = vand.u32 127, %v80_v6  ;;  %s3299_s21 = sld [smem:[#allocation9_spill]]  ;;  %v2180_v48 = vld [vmem:[#allocation2] ss:$0 sm:$0xff]  ;;  %vm612_vm11 = vcmask 1043456   ;;  %vm1050_vm12 = vcmask 523264  }
  0x16   :  { %2342 = vmatprep.mubr.msk.bf16.mxu0 %vm2678_vm0, %v2677_v1  ;;  %2350 = vmatprep.mubr.msk.bf16.mxu1 %vm2678_vm0, %v2677_v1  ;;  %s3300_s2 = sld [smem:[#allocation11_spill]]  ;;  %vm2011_vm13 = vcmask 1041409   ;;  %vm2014_vm14 = vcmask 254976   ;;  %vm2153_vm15 = vcmask 41984  }
  0x17   :  { %vm170_vm4 = vcmp.lt.s32.totalorder %v81_v7, 16  ;;  %vm174_vm5 = vcmp.ge.s32.totalorder %v81_v7, 16  ;;  %vm175_vm6 = vcmp.lt.s32.totalorder %v81_v7, 32 }
  0x18   :  { %v2841_v34 = vsel %vm170_vm4, 1.0, %v2677_v1  ;;  %vm176_vm7 = vmand %vm174_vm5, %vm175_vm6 }
  0x19   :  { %v2791_v2 = vld [vmem:[%s3297_s25] sm:$0xff]  ;;  %v2800_v4 = vld [vmem:[%s3297_s25 + $0x8] sm:$0xff]  ;;  %s2679_s25 = smov 32   ;;  %v2845_v35 = vsel %vm176_vm7, 1.0, %v2677_v1 }
  0x1a   :  { %83 = vperm.xlu0 %2535, %v2791_v2   ;;  %v2537_v3 = vld [vmem:[%s3298_s6 + $0x8] sm:$0xff]   ;;  %v2538_v5 = vld [vmem:[%s3298_s6] sm:$0xff]   ;;  %s2680_s6 = smov 96   ;;  %vm159_vm8 = vcmp.eq.s32.totalorder %v2791_v2, 1  ;;  %vm160_vm9 = vcmp.eq.s32.totalorder %v2800_v4, 1 }
  0x1b   :  { %2339 = vmatpush3.bf16.msra.mxu0 %v2537_v3  ;;  %v156_v13 = vld [vmem:[%s3299_s21] sm:$0xff] }
  0x1c   :  { %2340 = vmatprep.subr.bf16.mxu0 %v2677_v1  ;;  %v2539_v32 = vld [vmem:[%s3300_s2 + $0x8] sm:$0xff]   ;;  %v2540_v33 = vld [vmem:[%s3300_s2] sm:$0xff]  }
  0x1d   :  { %2347 = vmatpush3.bf16.msra.mxu1 %v2539_v32 }
  0x1e   :  { %86 = vperm.xlu0 %2535, %v2800_v4   ;;  %2348 = vmatprep.subr.bf16.mxu1 %v2677_v1 }
  0x1f   :  { %2341 = vmatpush3.bf16.msra.mxu0 %v2538_v5  ;;  %v2175_v5 = vsel %vm159_vm8, 1.0, %v2677_v1 }
  0x20   :  { %2354 = vmatprep.subr.bf16.mxu0 %v2677_v1 }
  0x21   :  { %2349 = vmatpush3.bf16.msra.mxu1 %v2540_v33 }
  0x22   :  { %2360 = vmatprep.subr.bf16.mxu1 %v2677_v1 }
  0x95   :  { %v84_v8 = vpop.permute.xlu0 %83 }
  0x96   :  { %vm88_vm1 = vcmp.eq.s32.totalorder %v84_v8, %v81_v7  ;;  %v2176_v8 = vsel %vm160_vm9, 1.0, %v2677_v1 }
  0x97   :  { %v2170_v10 = vsel %vm88_vm1, 1.0, %v2677_v1  ;;  %v168_v2 = vmul.f32 -1e+10, %v2176_v8 }
  0x99   :  { %v87_v9 = vpop.permute.xlu0 %86 }
  0x9a   :  { %vm89_vm2 = vcmp.eq.s32.totalorder %v87_v9, %v81_v7  ;;  %v165_v7 = vsub.f32 1.0, %v2175_v5  ;;  %v166_v9 = vsub.f32 1.0, %v2176_v8 }
  0x9b   :  { %v2171_v11 = vsel %vm89_vm2, 1.0, %v2677_v1 }
  0x9c   :  { %v94_v12 = vpack.c.bf16 %v2171_v11, %v2170_v10  ;;  %v167_v10 = vmul.f32 -1e+10, %v2175_v5 }
  0x9e   :  { %2343 = vmatmul.mubr.msk.bf16.vlgmr.msra.gmra.mxu0 %vm111_vm3, %v94_v12 }
  0x9f   :  { %2356 = vmatprep.mubr.msk.bf16.mxu0 %vm2678_vm0, %v2677_v1 }
 0x15e   :  { %v149_v14 = vpop.f32.mrf.mxu0 }
 0x15f   :  { %v2820_v15 = vadd.f32 %v156_v13, %v149_v14 }
 0x160   :  { %v2344_v16 = vpop.f32.mrf.mxu0 }
 0x161   :  { %v207_v17 = vsel %vm111_vm3, %v2820_v15, 0.0 }
 0x162   :  { %208 = vadd.xlane.f32.xlu1 %v207_v17  ;;  %v152_v18 = vpop.f32.mrf.mxu0 }
 0x163   :  { %v2824_v19 = vadd.f32 %v156_v13, %v152_v18 }
 0x164   :  { %v2345_v20 = vpop.f32.mrf.mxu0 }
 0x165   :  { %v210_v21 = vsel %vm111_vm3, %v2824_v19, 0.0 }
 0x166   :  { %211 = vadd.xlane.f32.xlu1 %v210_v21 }
 0x1eb   :  { %v209_v22 = vpop.xlane.xlu1 %208 }
 0x1ec   :  { %v214_v23 = vmul.f32 0.03125, %v209_v22 }
 0x1ee   :  { %v216_v24 = vsub.f32 %v2820_v15, %v214_v23 }
 0x1ef   :  { %v212_v25 = vpop.xlane.xlu1 %211 }
 0x1f0   :  { %v215_v26 = vmul.f32 0.03125, %v212_v25  ;;  %v218_v27 = vmul.f32 %v216_v24, %v216_v24 }
 0x1f2   :  { %v217_v28 = vsub.f32 %v2824_v19, %v215_v26  ;;  %v220_v29 = vsel %vm111_vm3, %v218_v27, 0.0 }
 0x1f3   :  { %221 = vadd.xlane.f32.xlu0 %v220_v29 }
 0x1f4   :  { %v219_v30 = vmul.f32 %v217_v28, %v217_v28 }
 0x1f6   :  { %v223_v31 = vsel %vm111_vm3, %v219_v30, 0.0 }
 0x1f7   :  { %224 = vadd.xlane.f32.xlu1 %v223_v31 }
 0x208   :  { %310 = vrot.lane.b32.xlu1 %v2841_v34, %s2679_s25 }
 0x20c   :  { %472 = vrot.lane.b32.xlu1 %v2845_v35, %s2679_s25 }
 0x27c   :  { %v222_v36 = vpop.xlane.xlu0 %221 }
 0x27d   :  { %v226_v37 = vmul.f32 0.03125, %v222_v36 }
 0x27f   :  { %v228_v38 = vadd.f32 1e-05, %v226_v37 }
 0x280   :  { %v225_v39 = vpop.xlane.xlu1 %224 }
 0x281   :  { %2559 = vrsqrt.f32 %v228_v38  ;;  %v227_v40 = vmul.f32 0.03125, %v225_v39 }
 0x283   :  { %v229_v41 = vadd.f32 1e-05, %v227_v40 }
 0x284   :  { %v2854_v53 = vpop.permute.xlu1 %310 }
 0x285   :  { %2561 = vrsqrt.f32 %v229_v41 }
 0x288   :  { %v2856_v54 = vpop.permute.xlu1 %472 }
 0x28e   :  { %v2560_v42 = vpop.eup %2559 }
 0x28f   :  { %v232_v43 = vmul.f32 %v2560_v42, %v216_v24 }
 0x291   :  { %v240_v47 = vmul.f32 %v2179_v44, %v232_v43 }
 0x292   :  { %v2562_v45 = vpop.eup %2561 }
 0x293   :  { %v233_v46 = vmul.f32 %v2562_v45, %v217_v28  ;;  %v248_v50 = vadd.f32 %v2180_v48, %v240_v47 }
 0x295   :  { %v241_v49 = vmul.f32 %v2179_v44, %v233_v46 }
 0x297   :  { %v249_v51 = vadd.f32 %v2180_v48, %v241_v49 }
 0x299   :  { %v250_v52 = vpack.c.bf16 %v249_v51, %v248_v50 }
 0x29b   :  { %2351 = vmatmul.mubr.msk.bf16.vlgmr.msra.gmra.mxu1 %vm111_vm3, %v250_v52 }
 0x29c   :  { %2362 = vmatprep.mubr.msk.bf16.mxu1 %vm2678_vm0, %v2677_v1 }
 0x35b   :  { %v2858_v55 = vpop.f32.mrf.mxu1 }
 0x35c   :  { %v313_v56 = vmul.f32 %v2854_v53, %v2858_v55  ;;  %v475_v57 = vmul.f32 %v2856_v54, %v2858_v55  ;;  %v307_v16 = vpack.c.bf16 %v2858_v55, %v2858_v55 }
 0x35d   :  { %v2352_v58 = vpop.f32.mrf.mxu1 }
 0x35e   :  { %v315_v59 = vpack.c.bf16 %v313_v56, %v313_v56  ;;  %v477_v60 = vpack.c.bf16 %v475_v57, %v475_v57 }
 0x35f   :  { %v2864_v61 = vpop.f32.mrf.mxu1 }
 0x360   :  { %318 = vrot.lane.b32.xlu1 %v315_v59, %s2680_s6  ;;  %480 = vrot.lane.b32.xlu0 %v477_v60, %s2680_s6  ;;  %v314_v62 = vmul.f32 %v2854_v53, %v2864_v61  ;;  %v476_v3 = vmul.f32 %v2856_v54, %v2864_v61  ;;  %v308_v20 = vpack.c.bf16 %v2864_v61, %v2864_v61 }
 0x361   :  { %v2353_v63 = vpop.f32.mrf.mxu1 }
 0x362   :  { %v316_v0 = vpack.c.bf16 %v314_v62, %v314_v62  ;;  %v478_v6 = vpack.c.bf16 %v476_v3, %v476_v3 }
 0x364   :  { %367 = vrot.lane.b32.xlu1 %v316_v0, %s2680_s6 }
 0x368   :  { %526 = vrot.lane.b32.xlu1 %v478_v6, %s2680_s6 }
 0x36c   :  { %417 = vperm.xlu1 %2536, %v165_v7  }
 0x370   :  { %422 = vperm.xlu1 %2536, %v166_v9  }
 0x374   :  { %429 = vperm.xlu1 %2536, %v167_v10  }
 0x378   :  { %434 = vperm.xlu1 %2536, %v168_v2  }
 0x3d2   :  { %v319_v11 = vpop.permute.xlu1 %318  ;;  %v481_v14 = vpop.permute.xlu0 %480 }
 0x3d3   :  { %v324_v12 = vsel %vm111_vm3, %v319_v11, 0  ;;  %v483_v17 = vsel %vm111_vm3, %v481_v14, 0 }
 0x3d4   :  { %2355 = vmatpush3.bf16.xpose.msra.mxu0 %v324_v12 }
 0x3d5   :  { %2366 = vmatprep.subr.bf16.mxu0 %v2677_v1 }
 0x3d6   :  { %v368_v4 = vpop.permute.xlu1 %367 }
 0x3d7   :  { %v373_v13 = vsel %vm111_vm3, %v368_v4, 0 }
 0x3d8   :  { %2361 = vmatpush3.bf16.xpose.msra.mxu1 %v373_v13 }
 0x3d9   :  { %2372 = vmatprep.subr.bf16.mxu1 %v2677_v1 }
 0x3da   :  { %v527_v18 = vpop.permute.xlu1 %526 }
 0x3db   :  { %2357 = vmatmul.mubr.msk.bf16.vlgmr.msra.gmra.mxu0 %vm111_vm3, %v307_v16  ;;  %v529_v21 = vsel %vm111_vm3, %v527_v18, 0 }
 0x3dc   :  { %2367 = vmatpush3.bf16.xpose.msra.mxu0 %v483_v17  ;;  %2368 = vmatprep.mubr.msk.bf16.mxu0 %vm2678_vm0, %v2677_v1 }
 0x3dd   :  { %2378 = vmatprep.subr.bf16.mxu0 %v2677_v1 }
 0x3df   :  { %2363 = vmatmul.mubr.msk.bf16.vlgmr.msra.gmra.mxu1 %vm111_vm3, %v308_v20 }
 0x3e0   :  { %2373 = vmatpush3.bf16.xpose.msra.mxu1 %v529_v21  ;;  %2374 = vmatprep.mubr.msk.bf16.mxu1 %vm2678_vm0, %v2677_v1 }
 0x3e1   :  { %2384 = vmatprep.subr.bf16.mxu1 %v2677_v1 }
 0x3e3   :  { %2369 = vmatmul.mubr.msk.bf16.vlgmr.msra.gmra.mxu0 %vm111_vm3, %v307_v16 }
 0x3e4   :  { %2380 = vmatprep.mubr.msk.bf16.mxu0 %vm2678_vm0, %v2677_v1 }
 0x3e7   :  { %2375 = vmatmul.mubr.msk.bf16.vlgmr.msra.gmra.mxu1 %vm111_vm3, %v308_v20  ;;  %v2902_v22 = vpop.permute.xlu1 %417 }
 0x3e8   :  { %2386 = vmatprep.mubr.msk.bf16.mxu1 %vm2678_vm0, %v2677_v1 }
 0x3eb   :  { %v2904_v24 = vpop.permute.xlu1 %422 }
 0x3ef   :  { %v2906_v30 = vpop.permute.xlu1 %429 }
 0x3f3   :  { %v2911_v42 = vpop.permute.xlu1 %434 }
 0x49b   :  { %v360_v23 = vpop.f32.mrf.mxu0 }
 0x49c   :  { %v425_v33 = vmul.f32 %v2902_v22, %v360_v23 }
 0x49d   :  { %v2358_v25 = vpop.f32.mrf.mxu0 }
 0x49e   :  { %v437_v46 = vadd.f32 %v2906_v30, %v425_v33 }
 0x49f   :  { %v363_v26 = vpop.f32.mrf.mxu0  ;;  %v409_v27 = vpop.f32.mrf.mxu1 }
 0x4a0   :  { %v426_v43 = vmul.f32 %v2904_v24, %v409_v27  ;;  %v440_v51 = vsel %vm439_vm10, %v437_v46, -inf }
 0x4a1   :  { %v2359_v28 = vpop.f32.mrf.mxu0  ;;  %v2364_v29 = vpop.f32.mrf.mxu1 }
 0x4a2   :  { %v438_v56 = vadd.f32 %v2911_v42, %v426_v43 }
 0x4a3   :  { %v412_v31 = vpop.f32.mrf.mxu1  ;;  %v519_v32 = vpop.f32.mrf.mxu0 }
 0x4a4   :  { %v571_v36 = vmul.f32 %v519_v32, %v2902_v22  ;;  %v443_v58 = vsel %vm439_vm10, %v438_v56, -inf }
 0x4a5   :  { %v2365_v37 = vpop.f32.mrf.mxu1  ;;  %v2370_v38 = vpop.f32.mrf.mxu0 }
 0x4a6   :  { %v573_v39 = vadd.f32 %v571_v36, %v2906_v30 }
 0x4a7   :  { %v522_v40 = vpop.f32.mrf.mxu0  ;;  %v565_v41 = vpop.f32.mrf.mxu1 }
 0x4a8   :  { %v572_v44 = vmul.f32 %v565_v41, %v2904_v24  ;;  %v575_v45 = vsel %vm439_vm10, %v573_v39, -inf }
 0x4a9   :  { %v2371_v47 = vpop.f32.mrf.mxu0  ;;  %v2376_v48 = vpop.f32.mrf.mxu1  ;;  %576 = vmax.xlane.f32.xlu0 %v575_v45 }
 0x4aa   :  { %v574_v49 = vadd.f32 %v572_v44, %v2911_v42 }
 0x4ab   :  { %v568_v50 = vpop.f32.mrf.mxu1 }
 0x4ac   :  { %v578_v52 = vsel %vm439_vm10, %v574_v49, -inf }
 0x4ad   :  { %v2377_v57 = vpop.f32.mrf.mxu1  ;;  %441 = vmax.xlane.f32.xlu0 %v440_v51  ;;  %579 = vmax.xlane.f32.xlu1 %v578_v52 }
 0x4b1   :  { %444 = vmax.xlane.f32.xlu0 %v443_v58  ;;  %v2541_v58 = vld [vmem:[%s3274_s4 + $0x8] sm:$0xff]  }
 0x4be   :  { %599 = vrot.lane.b32.xlu1 %v2845_v35, %s2681_s27 }
 0x4c7   :  { %464 = vrot.lane.b32.xlu0 %v2841_v34, %s2681_s27 }
 0x532   :  { %v577_v59 = vpop.xlane.xlu0 %576 }
 0x533   :  { %v581_v11 = vsub.f32 %v573_v39, %v577_v59  ;;  %v2542_v59 = vld [vmem:[%s3274_s4] sm:$0xff]  }
 0x535   :  { %v583_v13 = vmul.f32 1.442695, %v581_v11 }
 0x536   :  { %v442_v60 = vpop.xlane.xlu0 %441  ;;  %v580_v62 = vpop.xlane.xlu1 %579 }
 0x537   :  { %v582_v63 = vsub.f32 %v574_v49, %v580_v62  ;;  %v446_v35 = vsub.f32 %v437_v46, %v442_v60 }
 0x539   :  { %v585_v7 = vmul.f32 1.442695, %v582_v63  ;;  %v448_v12 = vmul.f32 1.442695, %v446_v35 }
 0x53a   :  { %v445_v0 = vpop.xlane.xlu0 %444  ;;  %v2926_v3 = vpop.permute.xlu1 %599 }
 0x53b   :  { %v447_v5 = vsub.f32 %v438_v56, %v445_v0  ;;  %v602_v6 = vmul.f32 %v2926_v3, %v2858_v55  ;;  %v603_v17 = vmul.f32 %v2926_v3, %v2864_v61 }
 0x53d   :  { %v450_v8 = vmul.f32 1.442695, %v447_v5  ;;  %v604_v9 = vpack.c.bf16 %v602_v6, %v602_v6  ;;  %v605_v21 = vpack.c.bf16 %v603_v17, %v603_v17 }
 0x53e   :  { %v2938_v23 = vpop.permute.xlu0 %464 }
 0x53f   :  { %2563 = vpow2.f32 %v450_v8  ;;  %607 = vrot.lane.b32.xlu1 %v604_v9, %s2681_s27  ;;  %v467_v25 = vmul.f32 %v2938_v23, %v2858_v55  ;;  %v468_v27 = vmul.f32 %v2938_v23, %v2864_v61 }
 0x540   :  { %2565 = vpow2.f32 %v585_v7 }
 0x541   :  { %2567 = vpow2.f32 %v448_v12  ;;  %v469_v26 = vpack.c.bf16 %v467_v25, %v467_v25  ;;  %v470_v28 = vpack.c.bf16 %v468_v27, %v468_v27 }
 0x542   :  { %2569 = vpow2.f32 %v583_v13 }
 0x54c   :  { %v2564_v34 = vpop.eup %2563 }
 0x54d   :  { %v455_v10 = vsel %vm439_vm10, %v2564_v34, 0.0  ;;  %v2566_v2 = vpop.eup %2565 }
 0x54e   :  { %456 = vadd.xlane.f32.xlu0 %v455_v10  ;;  %v590_v4 = vsel %vm439_vm10, %v2566_v2, 0.0  ;;  %v2568_v14 = vpop.eup %2567 }
 0x54f   :  { %v452_v16 = vsel %vm439_vm10, %v2568_v14, 0.0  ;;  %v2570_v18 = vpop.eup %2569 }
 0x550   :  { %v587_v20 = vsel %vm439_vm10, %v2570_v18, 0.0 }
 0x552   :  { %591 = vadd.xlane.f32.xlu0 %v590_v4 }
 0x563   :  { %453 = vadd.xlane.f32.xlu1 %v452_v16 }
 0x567   :  { %588 = vadd.xlane.f32.xlu1 %v587_v20 }
 0x568   :  { %657 = vrot.lane.b32.xlu0 %v605_v21, %s2681_s27 }
 0x578   :  { %706 = vrot.lane.b32.xlu1 %v469_v26, %s2681_s27 }
 0x57c   :  { %755 = vrot.lane.b32.xlu1 %v470_v28, %s2681_s27 }
 0x5b1   :  { %v608_v29 = vpop.permute.xlu1 %607 }
 0x5b2   :  { %v614_v31 = vsel %vm612_vm11, %v608_v29, 0 }
 0x5b3   :  { %2379 = vmatpush3.bf16.msra.mxu0 %v614_v31 }
 0x5b4   :  { %2390 = vmatprep.subr.bf16.mxu0 %v2677_v1 }
 0x5d7   :  { %v457_v32 = vpop.xlane.xlu0 %456 }
 0x5db   :  { %v592_v33 = vpop.xlane.xlu0 %591 }
 0x5dc   :  { %2571 = vrcp.f32 %v592_v33 }
 0x5dd   :  { %2573 = vrcp.f32 %v457_v32 }
 0x5df   :  { %v658_v55 = vpop.permute.xlu0 %657 }
 0x5e0   :  { %v663_v36 = vsel %vm612_vm11, %v658_v55, 0 }
 0x5e1   :  { %2385 = vmatpush3.bf16.msra.mxu1 %v663_v36 }
 0x5e2   :  { %2396 = vmatprep.subr.bf16.mxu1 %v2677_v1 }
 0x5e9   :  { %v2572_v61 = vpop.eup %2571 }
 0x5ea   :  { %v596_v37 = vmul.f32 %v2572_v61, %v2566_v2  ;;  %v2574_v41 = vpop.eup %2573 }
 0x5eb   :  { %v461_v44 = vmul.f32 %v2574_v41, %v2564_v34 }
 0x5ec   :  { %v454_v38 = vpop.xlane.xlu1 %453  ;;  %v598_v39 = vpack.c.bf16 %v596_v37, %v596_v37 }
 0x5ed   :  { %v463_v47 = vpack.c.bf16 %v461_v44, %v461_v44 }
 0x5ee   :  { %2387 = vmatmul.mubr.msk.bf16.vlgmr.msra.gmra.mxu1 %vm439_vm10, %v598_v39 }
 0x5ef   :  { %2398 = vmatprep.mubr.msk.bf16.mxu1 %vm2678_vm0, %v2677_v1 }
 0x5f0   :  { %v589_v40 = vpop.xlane.xlu1 %588 }
 0x5f1   :  { %2575 = vrcp.f32 %v589_v40 }
 0x5f2   :  { %2577 = vrcp.f32 %v454_v38 }
 0x5f4   :  { %v707_v43 = vpop.permute.xlu1 %706 }
 0x5f5   :  { %v712_v52 = vsel %vm612_vm11, %v707_v43, 0 }
 0x5f8   :  { %v756_v45 = vpop.permute.xlu1 %755 }
 0x5f9   :  { %v761_v46 = vsel %vm612_vm11, %v756_v45, 0 }
 0x5fa   :  { %2397 = vmatpush3.bf16.msra.mxu1 %v761_v46  ;;  %v2195_v46 = vld [vmem:[%s3277_s7] ss:$0 sm:$0xff] }
 0x5fb   :  { %2410 = vmatprep.subr.bf16.mxu1 %v2677_v1 }
 0x5fd   :  { %2399 = vmatmul.mubr.msk.bf16.vlgmr.msra.gmra.mxu1 %vm439_vm10, %v463_v47 }
 0x5fe   :  { %v2576_v48 = vpop.eup %2575  ;;  %2414 = vmatprep.mubr.msk.bf16.mxu1 %vm2678_vm0, %v2677_v1 }
 0x5ff   :  { %v595_v49 = vmul.f32 %v2576_v48, %v2570_v18  ;;  %v2578_v51 = vpop.eup %2577  ;;  %v2196_v48 = vld [vmem:[%s3278_s8] ss:$0 sm:$0xff] }
 0x600   :  { %v460_v56 = vmul.f32 %v2578_v51, %v2568_v14 }
 0x601   :  { %v597_v50 = vpack.c.bf16 %v595_v49, %v595_v49 }
 0x602   :  { %v462_v57 = vpack.c.bf16 %v460_v56, %v460_v56 }
 0x603   :  { %2381 = vmatmul.mubr.msk.bf16.vlgmr.msra.gmra.mxu0 %vm439_vm10, %v597_v50 }
 0x604   :  { %2391 = vmatpush3.bf16.msra.mxu0 %v712_v52  ;;  %2392 = vmatprep.mubr.msk.bf16.mxu0 %vm2678_vm0, %v2677_v1 }
 0x605   :  { %2402 = vmatprep.subr.bf16.mxu0 %v2677_v1 }
 0x60b   :  { %2393 = vmatmul.mubr.msk.bf16.vlgmr.msra.gmra.mxu0 %vm439_vm10, %v462_v57 }
 0x60c   :  { %2406 = vmatprep.mubr.msk.bf16.mxu0 %vm2678_vm0, %v2677_v1  ;;  %2403 = vmatpush3.bf16.msra.mxu0 %v2541_v58 }
 0x60d   :  { %2404 = vmatprep.subr.bf16.mxu0 %v2677_v1 }
 0x610   :  { %2405 = vmatpush3.bf16.msra.mxu0 %v2542_v59 }
 0x611   :  { %2418 = vmatprep.subr.bf16.mxu0 %v2677_v1 }
 0x6ae   :  { %v699_v60 = vpop.f32.mrf.mxu1 }
 0x6b0   :  { %v2388_v62 = vpop.f32.mrf.mxu1 }
 0x6b2   :  { %v702_v63 = vpop.f32.mrf.mxu1 }
 0x6b4   :  { %v2389_v0 = vpop.f32.mrf.mxu1 }
 0x6bd   :  { %v797_v5 = vpop.f32.mrf.mxu1 }
 0x6be   :  { %v798_v11 = vadd.f32 %v797_v5, %v699_v60 }
 0x6bf   :  { %v2400_v6 = vpop.f32.mrf.mxu1 }
 0x6c1   :  { %v800_v7 = vpop.f32.mrf.mxu1 }
 0x6c3   :  { %v650_v8 = vpop.f32.mrf.mxu0  ;;  %v2401_v9 = vpop.f32.mrf.mxu1 }
 0x6c5   :  { %v2382_v35 = vpop.f32.mrf.mxu0 }
 0x6c7   :  { %v653_v34 = vpop.f32.mrf.mxu0 }
 0x6c8   :  { %v2543_v34 = vld [vmem:[%s3281_s11 + $0x8] sm:$0xff]  }
 0x6c9   :  { %v2383_v10 = vpop.f32.mrf.mxu0  ;;  %2411 = vmatpush3.bf16.msra.mxu1 %v2543_v34 }
 0x6ca   :  { %v2544_v10 = vld [vmem:[%s3281_s11] sm:$0xff]   ;;  %2412 = vmatprep.subr.bf16.mxu1 %v2677_v1 }
 0x6cb   :  { %v748_v2 = vpop.f32.mrf.mxu0 }
 0x6cc   :  { %v749_v12 = vadd.f32 %v748_v2, %v650_v8 }
 0x6cd   :  { %v2394_v4 = vpop.f32.mrf.mxu0  ;;  %2413 = vmatpush3.bf16.msra.mxu1 %v2544_v10 }
 0x6ce   :  { %v803_v13 = vpack.c.bf16 %v798_v11, %v749_v12  ;;  %2430 = vmatprep.subr.bf16.mxu1 %v2677_v1 }
 0x6cf   :  { %v751_v14 = vpop.f32.mrf.mxu0 }
 0x6d0   :  { %2407 = vmatmul.mubr.msk.bf16.vlgmr.msra.gmra.mxu0 %vm111_vm3, %v803_v13 }
 0x6d1   :  { %v2395_v16 = vpop.f32.mrf.mxu0  ;;  %2426 = vmatprep.mubr.msk.bf16.mxu0 %vm2678_vm0, %v2677_v1 }
 0x790   :  { %v853_v17 = vpop.f32.mrf.mxu0 }
 0x791   :  { %v2978_v18 = vadd.f32 %v853_v17, %v2820_v15 }
 0x792   :  { %v2408_v20 = vpop.f32.mrf.mxu0 }
 0x793   :  { %v862_v21 = vsel %vm111_vm3, %v2978_v18, 0.0  ;;  %v2197_v20 = vld [vmem:[%s3279_s9] ss:$0 sm:$0xff] }
 0x794   :  { %863 = vadd.xlane.f32.xlu0 %v862_v21  ;;  %v856_v25 = vpop.f32.mrf.mxu0 }
 0x795   :  { %v2983_v26 = vadd.f32 %v856_v25, %v2824_v19 }
 0x796   :  { %v2409_v27 = vpop.f32.mrf.mxu0 }
 0x797   :  { %v865_v28 = vsel %vm111_vm3, %v2983_v26, 0.0 }
 0x798   :  { %866 = vadd.xlane.f32.xlu1 %v865_v28  ;;  %v2198_v28 = vld [vmem:[%s3280_s10] ss:$0 sm:$0xff] }
 0x81d   :  { %v864_v29 = vpop.xlane.xlu0 %863 }
 0x81e   :  { %v868_v31 = vmul.f32 0.03125, %v864_v29 }
 0x820   :  { %v870_v32 = vsub.f32 %v2978_v18, %v868_v31 }
 0x821   :  { %v867_v15 = vpop.xlane.xlu1 %866 }
 0x822   :  { %v869_v33 = vmul.f32 0.03125, %v867_v15  ;;  %v872_v55 = vmul.f32 %v870_v32, %v870_v32 }
 0x824   :  { %v871_v36 = vsub.f32 %v2983_v26, %v869_v33  ;;  %v874_v61 = vsel %vm111_vm3, %v872_v55, 0.0  ;;  %v2545_v33 = vld [vmem:[%s3283_s13 + $0x18] sm:$0xff]   ;;  %v2546_v55 = vld [vmem:[%s3283_s13 + $0x10] sm:$0xff]  }
 0x825   :  { %875 = vadd.xlane.f32.xlu0 %v874_v61  ;;  %2419 = vmatpush3.bf16.msra.mxu0 %v2545_v33  ;;  %v2548_v61 = vld [vmem:[%s3283_s13] sm:$0xff]  }
 0x826   :  { %v873_v37 = vmul.f32 %v871_v36, %v871_v36  ;;  %2420 = vmatprep.subr.bf16.mxu0 %v2677_v1 }
 0x828   :  { %v877_v19 = vsel %vm111_vm3, %v873_v37, 0.0  ;;  %v2199_v37 = vld [vmem:[%s3282_s12] ss:$0 sm:$0xff] }
 0x829   :  { %878 = vadd.xlane.f32.xlu0 %v877_v19  ;;  %2421 = vmatpush3.bf16.msra.mxu0 %v2546_v55 }
 0x82a   :  { %2422 = vmatprep.subr.bf16.mxu0 %v2677_v1 }
 0x8ae   :  { %v876_v38 = vpop.xlane.xlu0 %875 }
 0x8af   :  { %v880_v39 = vmul.f32 0.03125, %v876_v38 }
 0x8b1   :  { %v882_v40 = vadd.f32 1e-05, %v880_v39 }
 0x8b2   :  { %v879_v41 = vpop.xlane.xlu0 %878 }
 0x8b3   :  { %2579 = vrsqrt.f32 %v882_v40  ;;  %v881_v43 = vmul.f32 0.03125, %v879_v41 }
 0x8b5   :  { %v883_v44 = vadd.f32 1e-05, %v881_v43 }
 0x8b7   :  { %2581 = vrsqrt.f32 %v883_v44 }
 0x8c0   :  { %v2580_v45 = vpop.eup %2579 }
 0x8c1   :  { %v886_v47 = vmul.f32 %v2580_v45, %v870_v32 }
 0x8c3   :  { %v894_v49 = vmul.f32 %v2195_v46, %v886_v47 }
 0x8c4   :  { %v2582_v50 = vpop.eup %2581 }
 0x8c5   :  { %v902_v51 = vadd.f32 %v2196_v48, %v894_v49  ;;  %v887_v52 = vmul.f32 %v2582_v50, %v871_v36  ;;  %v2547_v36 = vld [vmem:[%s3283_s13 + $0x8] sm:$0xff]  }
 0x8c6   :  { %2423 = vmatpush3.bf16.msra.mxu0 %v2547_v36  ;;  %v2237_v36 = vld [vmem:[#allocation2 + $0x1] ss:$0 sm:$0xff] }
 0x8c7   :  { %v904_v56 = vsel %vm111_vm3, %v902_v51, 0.0  ;;  %v895_v57 = vmul.f32 %v2195_v46, %v887_v52  ;;  %2424 = vmatprep.subr.bf16.mxu0 %v2677_v1 }
 0x8c8   :  { %905 = vadd.xlane.f32.xlu1 %v904_v56 }
 0x8c9   :  { %v903_v58 = vadd.f32 %v2196_v48, %v895_v57 }
 0x8ca   :  { %2425 = vmatpush3.bf16.msra.mxu0 %v2548_v61 }
 0x8cb   :  { %v907_v59 = vsel %vm111_vm3, %v903_v58, 0.0  ;;  %2444 = vmatprep.subr.bf16.mxu0 %v2677_v1 }
 0x8cc   :  { %908 = vadd.xlane.f32.xlu0 %v907_v59 }
 0x951   :  { %v906_v60 = vpop.xlane.xlu1 %905 }
 0x952   :  { %v910_v62 = vmul.f32 0.03125, %v906_v60 }
 0x954   :  { %v912_v63 = vsub.f32 %v902_v51, %v910_v62 }
 0x955   :  { %v909_v0 = vpop.xlane.xlu0 %908 }
 0x956   :  { %v911_v5 = vmul.f32 0.03125, %v909_v0  ;;  %v914_v6 = vmul.f32 %v912_v63, %v912_v63 }
 0x958   :  { %v913_v7 = vsub.f32 %v903_v58, %v911_v5  ;;  %v916_v8 = vsel %vm111_vm3, %v914_v6, 0.0  ;;  %v2203_v58 = vld [vmem:[%s3284_s14] ss:$0 sm:$0xff] }
 0x959   :  { %917 = vadd.xlane.f32.xlu1 %v916_v8 }
 0x95a   :  { %v915_v9 = vmul.f32 %v913_v7, %v913_v7 }
 0x95c   :  { %v919_v35 = vsel %vm111_vm3, %v915_v9, 0.0 }
 0x95d   :  { %920 = vadd.xlane.f32.xlu0 %v919_v35 }
 0x9e2   :  { %v918_v2 = vpop.xlane.xlu1 %917 }
 0x9e3   :  { %v922_v11 = vmul.f32 0.03125, %v918_v2 }
 0x9e5   :  { %v924_v12 = vadd.f32 1e-05, %v922_v11 }
 0x9e6   :  { %v921_v4 = vpop.xlane.xlu0 %920 }
 0x9e7   :  { %2583 = vrsqrt.f32 %v924_v12  ;;  %v923_v13 = vmul.f32 0.03125, %v921_v4 }
 0x9e9   :  { %v925_v14 = vadd.f32 1e-05, %v923_v13 }
 0x9eb   :  { %2585 = vrsqrt.f32 %v925_v14  ;;  %v2549_v14 = vld [vmem:[%s3300_s2 + $0x18] sm:$0xff]  }
 0x9f4   :  { %v2584_v16 = vpop.eup %2583 }
 0x9f5   :  { %v928_v17 = vmul.f32 %v2584_v16, %v912_v63  ;;  %v2550_v16 = vld [vmem:[%s3300_s2 + $0x10] sm:$0xff]  }
 0x9f7   :  { %v936_v27 = vmul.f32 %v2197_v20, %v928_v17 }
 0x9f8   :  { %v2586_v21 = vpop.eup %2585 }
 0x9f9   :  { %v929_v25 = vmul.f32 %v2586_v21, %v913_v7  ;;  %v944_v31 = vadd.f32 %v2198_v28, %v936_v27 }
 0x9fb   :  { %v937_v29 = vmul.f32 %v2197_v20, %v929_v25 }
 0x9fd   :  { %v945_v32 = vadd.f32 %v2198_v28, %v937_v29 }
 0x9ff   :  { %v946_v15 = vpack.c.bf16 %v945_v32, %v944_v31  ;;  %v2236_v32 = vld [vmem:[%s3275_s5 + $0x1] ss:$0 sm:$0xff] }
 0xa01   :  { %2415 = vmatmul.mubr.msk.bf16.vlgmr.msra.gmra.mxu1 %vm111_vm3, %v946_v15 }
 0xa02   :  { %2434 = vmatprep.mubr.msk.bf16.mxu1 %vm2678_vm0, %v2677_v1  ;;  %2431 = vmatpush3.bf16.msra.mxu1 %v2549_v14 }
 0xa03   :  { %2432 = vmatprep.subr.bf16.mxu1 %v2677_v1 }
 0xa06   :  { %2433 = vmatpush3.bf16.msra.mxu1 %v2550_v16 }
 0xa07   :  { %2438 = vmatprep.subr.bf16.mxu1 %v2677_v1 }
 0xac1   :  { %v1002_v19 = vpop.f32.mrf.mxu1 }
 0xac2   :  { %v1003_v38 = vadd.f32 %v2199_v37, %v1002_v19 }
 0xac3   :  { %v2416_v39 = vpop.f32.mrf.mxu1 }
 0xac4   :  { %v1011_v40 = vmul.f32 0.70710677, %v1003_v38  ;;  %v1009_v49 = vmul.f32 0.5, %v1003_v38 }
 0xac5   :  { %v1005_v41 = vpop.f32.mrf.mxu1 }
 0xac6   :  { %2587 = verf.f32 %v1011_v40  ;;  %v1006_v43 = vadd.f32 %v2199_v37, %v1005_v41 }
 0xac7   :  { %v2417_v44 = vpop.f32.mrf.mxu1 }
 0xac8   :  { %v1012_v45 = vmul.f32 0.70710677, %v1006_v43  ;;  %v1010_v50 = vmul.f32 0.5, %v1006_v43 }
 0xaca   :  { %2589 = verf.f32 %v1012_v45 }
 0xad3   :  { %v2588_v46 = vpop.eup %2587 }
 0xad4   :  { %v1015_v47 = vadd.f32 1.0, %v2588_v46 }
 0xad6   :  { %v1017_v52 = vmul.f32 %v1015_v47, %v1009_v49 }
 0xad7   :  { %v2590_v48 = vpop.eup %2589 }
 0xad8   :  { %v1016_v51 = vadd.f32 1.0, %v2590_v48 }
 0xada   :  { %v1018_v56 = vmul.f32 %v1016_v51, %v1010_v50 }
 0xadc   :  { %v1019_v57 = vpack.c.bf16 %v1018_v56, %v1017_v52 }
 0xade   :  { %2427 = vmatmul.mubr.msk.bf16.vlgmr.msra.gmra.mxu0 %vm1050_vm12, %v1019_v57 }
 0xadf   :  { %2446 = vmatprep.mubr.msk.bf16.mxu0 %vm2678_vm0, %v2677_v1 }
 0xb9e   :  { %v1088_v59 = vpop.f32.mrf.mxu0 }
 0xb9f   :  { %v1089_v60 = vadd.f32 %v2203_v58, %v1088_v59 }
 0xba0   :  { %v2428_v62 = vpop.f32.mrf.mxu0 }
 0xba1   :  { %v3044_v63 = vadd.f32 %v1089_v60, %v2978_v18 }
 0xba2   :  { %v1091_v0 = vpop.f32.mrf.mxu0 }
 0xba3   :  { %v1092_v5 = vadd.f32 %v2203_v58, %v1091_v0  ;;  %v1137_v6 = vsel %vm111_vm3, %v3044_v63, 0.0 }
 0xba4   :  { %1138 = vadd.xlane.f32.xlu1 %v1137_v6  ;;  %v2429_v7 = vpop.f32.mrf.mxu0 }
 0xba5   :  { %v3049_v8 = vadd.f32 %v1092_v5, %v2983_v26 }
 0xba7   :  { %v1140_v9 = vsel %vm111_vm3, %v3049_v8, 0.0 }
 0xba8   :  { %1141 = vadd.xlane.f32.xlu0 %v1140_v9 }
 0xc2d   :  { %v1139_v35 = vpop.xlane.xlu1 %1138 }
 0xc2e   :  { %v1143_v34 = vmul.f32 0.03125, %v1139_v35 }
 0xc30   :  { %v1145_v10 = vsub.f32 %v3044_v63, %v1143_v34 }
 0xc31   :  { %v1142_v18 = vpop.xlane.xlu0 %1141 }
 0xc32   :  { %v1144_v2 = vmul.f32 0.03125, %v1142_v18  ;;  %v1147_v11 = vmul.f32 %v1145_v10, %v1145_v10 }
 0xc34   :  { %v1146_v12 = vsub.f32 %v3049_v8, %v1144_v2  ;;  %v1149_v4 = vsel %vm111_vm3, %v1147_v11, 0.0 }
 0xc35   :  { %1150 = vadd.xlane.f32.xlu1 %v1149_v4 }
 0xc36   :  { %v1148_v13 = vmul.f32 %v1146_v12, %v1146_v12 }
 0xc38   :  { %v1152_v26 = vsel %vm111_vm3, %v1148_v13, 0.0 }
 0xc39   :  { %1153 = vadd.xlane.f32.xlu0 %v1152_v26 }
 0xcbe   :  { %v1151_v17 = vpop.xlane.xlu1 %1150 }
 0xcbf   :  { %v1155_v20 = vmul.f32 0.03125, %v1151_v17 }
 0xcc1   :  { %v1157_v21 = vadd.f32 1e-05, %v1155_v20 }
 0xcc2   :  { %v1154_v25 = vpop.xlane.xlu0 %1153 }
 0xcc3   :  { %2591 = vrsqrt.f32 %v1157_v21  ;;  %v1156_v27 = vmul.f32 0.03125, %v1154_v25 }
 0xcc5   :  { %v1158_v28 = vadd.f32 1e-05, %v1156_v27 }
 0xcc7   :  { %2593 = vrsqrt.f32 %v1158_v28 }
 0xcd0   :  { %v2592_v29 = vpop.eup %2591 }
 0xcd1   :  { %v1161_v31 = vmul.f32 %v2592_v29, %v1145_v10 }
 0xcd3   :  { %v1169_v55 = vmul.f32 %v2236_v32, %v1161_v31 }
 0xcd4   :  { %v2594_v15 = vpop.eup %2593 }
 0xcd5   :  { %v1162_v33 = vmul.f32 %v2594_v15, %v1146_v12  ;;  %v1177_v37 = vadd.f32 %v2237_v36, %v1169_v55 }
 0xcd7   :  { %v1170_v61 = vmul.f32 %v2236_v32, %v1162_v33 }
 0xcd9   :  { %v1178_v19 = vadd.f32 %v2237_v36, %v1170_v61 }
 0xcdb   :  { %v1179_v38 = vpack.c.bf16 %v1178_v19, %v1177_v37 }
 0xcdd   :  { %2435 = vmatmul.mubr.msk.bf16.vlgmr.msra.gmra.mxu1 %vm111_vm3, %v1179_v38 }
 0xcde   :  { %2440 = vmatprep.mubr.msk.bf16.mxu1 %vm2678_vm0, %v2677_v1 }
 0xd9d   :  { %v3071_v39 = vpop.f32.mrf.mxu1 }
 0xd9e   :  { %v1238_v40 = vmul.f32 %v3071_v39, %v2854_v53  ;;  %v1372_v44 = vmul.f32 %v3071_v39, %v2856_v54 }
 0xd9f   :  { %v2436_v41 = vpop.f32.mrf.mxu1 }
 0xda0   :  { %v1240_v43 = vpack.c.bf16 %v1238_v40, %v1238_v40  ;;  %v1374_v48 = vpack.c.bf16 %v1372_v44, %v1372_v44 }
 0xda1   :  { %v3077_v45 = vpop.f32.mrf.mxu1 }
 0xda2   :  { %1243 = vrot.lane.b32.xlu1 %v1240_v43, %s2680_s6  ;;  %v1239_v46 = vmul.f32 %v3077_v45, %v2854_v53  ;;  %v1373_v50 = vmul.f32 %v3077_v45, %v2856_v54  ;;  %v1236_v54 = vpack.c.bf16 %v3071_v39, %v3071_v39  ;;  %v1237_v62 = vpack.c.bf16 %v3077_v45, %v3077_v45 }
 0xda3   :  { %v2437_v47 = vpop.f32.mrf.mxu1 }
 0xda4   :  { %v1241_v49 = vpack.c.bf16 %v1239_v46, %v1239_v46  ;;  %v1375_v51 = vpack.c.bf16 %v1373_v50, %v1373_v50 }
 0xda6   :  { %1377 = vrot.lane.b32.xlu1 %v1374_v48, %s2680_s6  ;;  %1292 = vrot.lane.b32.xlu0 %v1241_v49, %s2680_s6 }
 0xdaa   :  { %1423 = vrot.lane.b32.xlu1 %v1375_v51, %s2680_s6 }
 0xe14   :  { %v1244_v52 = vpop.permute.xlu1 %1243 }
 0xe15   :  { %v1249_v56 = vsel %vm111_vm3, %v1244_v52, 0 }
 0xe16   :  { %2439 = vmatpush3.bf16.xpose.msra.mxu1 %v1249_v56 }
 0xe17   :  { %2450 = vmatprep.subr.bf16.mxu1 %v2677_v1 }
 0xe18   :  { %v1378_v53 = vpop.permute.xlu1 %1377  ;;  %v1293_v57 = vpop.permute.xlu0 %1292 }
 0xe19   :  { %v1298_v58 = vsel %vm111_vm3, %v1293_v57, 0  ;;  %v1380_v59 = vsel %vm111_vm3, %v1378_v53, 0 }
 0xe1a   :  { %2445 = vmatpush3.bf16.xpose.msra.mxu0 %v1298_v58 }
 0xe1b   :  { %2456 = vmatprep.subr.bf16.mxu0 %v2677_v1 }
 0xe1c   :  { %v1424_v60 = vpop.permute.xlu1 %1423 }
 0xe1d   :  { %2441 = vmatmul.mubr.msk.bf16.vlgmr.msra.gmra.mxu1 %vm111_vm3, %v1236_v54  ;;  %v1426_v0 = vsel %vm111_vm3, %v1424_v60, 0  ;;  %v1368_v60 = vmul.f32 %v3071_v39, %v2938_v23 }
 0xe1e   :  { %2451 = vmatpush3.bf16.xpose.msra.mxu1 %v1380_v59  ;;  %2452 = vmatprep.mubr.msk.bf16.mxu1 %vm2678_vm0, %v2677_v1 }
 0xe1f   :  { %2462 = vmatprep.subr.bf16.mxu1 %v2677_v1 }
 0xe21   :  { %2447 = vmatmul.mubr.msk.bf16.vlgmr.msra.gmra.mxu0 %vm111_vm3, %v1237_v62 }
 0xe22   :  { %2457 = vmatpush3.bf16.xpose.msra.mxu0 %v1426_v0  ;;  %2458 = vmatprep.mubr.msk.bf16.mxu0 %vm2678_vm0, %v2677_v1  ;;  %v1369_v0 = vmul.f32 %v3077_v45, %v2938_v23 }
 0xe23   :  { %2468 = vmatprep.subr.bf16.mxu0 %v2677_v1 }
 0xe25   :  { %2453 = vmatmul.mubr.msk.bf16.vlgmr.msra.gmra.mxu1 %vm111_vm3, %v1236_v54 }
 0xe26   :  { %2464 = vmatprep.mubr.msk.bf16.mxu1 %vm2678_vm0, %v2677_v1 }
 0xe29   :  { %2459 = vmatmul.mubr.msk.bf16.vlgmr.msra.gmra.mxu0 %vm111_vm3, %v1237_v62  ;;  %v1370_v62 = vpack.c.bf16 %v1368_v60, %v1368_v60 }
 0xe2a   :  { %2470 = vmatprep.mubr.msk.bf16.mxu0 %vm2678_vm0, %v2677_v1 }
 0xedd   :  { %v1285_v5 = vpop.f32.mrf.mxu1 }
 0xede   :  { %v1340_v2 = vmul.f32 %v1285_v5, %v2902_v22  ;;  %v1371_v5 = vpack.c.bf16 %v1369_v0, %v1369_v0 }
 0xedf   :  { %v2442_v6 = vpop.f32.mrf.mxu1 }
 0xee0   :  { %v1342_v21 = vadd.f32 %v1340_v2, %v2906_v30  ;;  %v1497_v6 = vmul.f32 %v3077_v45, %v2926_v3 }
 0xee1   :  { %v1288_v7 = vpop.f32.mrf.mxu1  ;;  %v1334_v9 = vpop.f32.mrf.mxu0 }
 0xee2   :  { %v1341_v16 = vmul.f32 %v1334_v9, %v2904_v24  ;;  %v1344_v32 = vsel %vm439_vm10, %v1342_v21, -inf  ;;  %v1499_v7 = vpack.c.bf16 %v1497_v6, %v1497_v6 }
 0xee3   :  { %v2443_v35 = vpop.f32.mrf.mxu1  ;;  %v2448_v34 = vpop.f32.mrf.mxu0 }
 0xee4   :  { %v1343_v15 = vadd.f32 %v1341_v16, %v2911_v42 }
 0xee5   :  { %v1337_v10 = vpop.f32.mrf.mxu0  ;;  %v1416_v18 = vpop.f32.mrf.mxu1 }
 0xee6   :  { %v1468_v11 = vmul.f32 %v1416_v18, %v2902_v22  ;;  %v1347_v55 = vsel %vm439_vm10, %v1343_v15, -inf }
 0xee7   :  { %v2449_v12 = vpop.f32.mrf.mxu0  ;;  %v2454_v4 = vpop.f32.mrf.mxu1 }
 0xee8   :  { %v1470_v13 = vadd.f32 %v1468_v11, %v2906_v30  ;;  %v1496_v30 = vmul.f32 %v3071_v39, %v2926_v3 }
 0xee9   :  { %v1419_v26 = vpop.f32.mrf.mxu1  ;;  %v1462_v14 = vpop.f32.mrf.mxu0 }
 0xeea   :  { %v1469_v17 = vmul.f32 %v1462_v14, %v2904_v24  ;;  %v1472_v20 = vsel %vm439_vm10, %v1470_v13, -inf  ;;  %v1498_v36 = vpack.c.bf16 %v1496_v30, %v1496_v30 }
 0xeeb   :  { %v2460_v25 = vpop.f32.mrf.mxu0  ;;  %1473 = vmax.xlane.f32.xlu0 %v1472_v20  ;;  %v2455_v27 = vpop.f32.mrf.mxu1 }
 0xeec   :  { %v1471_v28 = vadd.f32 %v1469_v17, %v2911_v42 }
 0xeed   :  { %v1465_v29 = vpop.f32.mrf.mxu0 }
 0xeee   :  { %v1475_v31 = vsel %vm439_vm10, %v1471_v28, -inf  ;;  %v2552_v29 = vld [vmem:[%s3274_s4 + $0x10] sm:$0xff]  }
 0xeef   :  { %1476 = vmax.xlane.f32.xlu1 %v1475_v31  ;;  %v2461_v33 = vpop.f32.mrf.mxu0  ;;  %1345 = vmax.xlane.f32.xlu0 %v1344_v32 }
 0xef3   :  { %1348 = vmax.xlane.f32.xlu0 %v1347_v55 }
 0xf00   :  { %1501 = vrot.lane.b32.xlu1 %v1498_v36, %s2681_s27 }
 0xf74   :  { %v1474_v61 = vpop.xlane.xlu0 %1473 }
 0xf75   :  { %v1478_v37 = vsub.f32 %v1470_v13, %v1474_v61 }
 0xf77   :  { %v1480_v42 = vmul.f32 1.442695, %v1478_v37 }
 0xf78   :  { %v1477_v19 = vpop.xlane.xlu1 %1476  ;;  %v1346_v38 = vpop.xlane.xlu0 %1345 }
 0xf79   :  { %v1350_v40 = vsub.f32 %v1342_v21, %v1346_v38  ;;  %v1479_v41 = vsub.f32 %v1471_v28, %v1477_v19  ;;  %v2551_v28 = vld [vmem:[%s3274_s4 + $0x18] sm:$0xff]  }
 0xf7b   :  { %v1352_v43 = vmul.f32 1.442695, %v1350_v40  ;;  %v1482_v49 = vmul.f32 1.442695, %v1479_v41 }
 0xf7c   :  { %v1502_v44 = vpop.permute.xlu1 %1501  ;;  %v1349_v46 = vpop.xlane.xlu0 %1348 }
 0xf7d   :  { %v1507_v47 = vsel %vm612_vm11, %v1502_v44, 0  ;;  %v1351_v48 = vsub.f32 %v1343_v15, %v1349_v46  ;;  %2595 = vpow2.f32 %v1352_v43 }
 0xf7e   :  { %2463 = vmatpush3.bf16.msra.mxu1 %v1507_v47  ;;  %2597 = vpow2.f32 %v1480_v42 }
 0xf7f   :  { %v1354_v50 = vmul.f32 1.442695, %v1351_v48  ;;  %2474 = vmatprep.subr.bf16.mxu1 %v2677_v1 }
 0xf81   :  { %2599 = vpow2.f32 %v1354_v50 }
 0xf82   :  { %2601 = vpow2.f32 %v1482_v49 }
 0xf8a   :  { %v2596_v51 = vpop.eup %2595 }
 0xf8b   :  { %v1356_v52 = vsel %vm439_vm10, %v2596_v51, 0.0  ;;  %v2598_v56 = vpop.eup %2597 }
 0xf8c   :  { %1357 = vadd.xlane.f32.xlu1 %v1356_v52  ;;  %v1484_v54 = vsel %vm439_vm10, %v2598_v56, 0.0 }
 0xf8e   :  { %v2600_v53 = vpop.eup %2599 }
 0xf8f   :  { %v1359_v57 = vsel %vm439_vm10, %v2600_v53, 0.0  ;;  %v2602_v58 = vpop.eup %2601 }
 0xf90   :  { %1360 = vadd.xlane.f32.xlu0 %v1359_v57  ;;  %1485 = vadd.xlane.f32.xlu1 %v1484_v54  ;;  %v1487_v59 = vsel %vm439_vm10, %v2602_v58, 0.0 }
 0xf94   :  { %1488 = vadd.xlane.f32.xlu0 %v1487_v59 }
 0xfa1   :  { %1599 = vrot.lane.b32.xlu1 %v1370_v62, %s2681_s27 }
 0xfa5   :  { %1648 = vrot.lane.b32.xlu1 %v1371_v5, %s2681_s27 }
 0xfaa   :  { %1550 = vrot.lane.b32.xlu0 %v1499_v7, %s2681_s27 }
0x1015   :  { %v1358_v9 = vpop.xlane.xlu1 %1357 }
0x1019   :  { %v1361_v35 = vpop.xlane.xlu0 %1360  ;;  %v1486_v34 = vpop.xlane.xlu1 %1485 }
0x101a   :  { %2603 = vrcp.f32 %v1486_v34 }
0x101d   :  { %v1489_v39 = vpop.xlane.xlu0 %1488  ;;  %v1600_v3 = vpop.permute.xlu1 %1599 }
0x101e   :  { %2605 = vrcp.f32 %v1489_v39  ;;  %v1605_v13 = vsel %vm612_vm11, %v1600_v3, 0 }
0x101f   :  { %2607 = vrcp.f32 %v1358_v9 }
0x1020   :  { %2609 = vrcp.f32 %v1361_v35 }
0x1021   :  { %v1551_v10 = vpop.permute.xlu0 %1550  ;;  %v1649_v26 = vpop.permute.xlu1 %1648 }
0x1022   :  { %v1556_v23 = vsel %vm612_vm11, %v1551_v10, 0  ;;  %v1654_v20 = vsel %vm612_vm11, %v1649_v26, 0 }
0x1023   :  { %2469 = vmatpush3.bf16.msra.mxu0 %v1556_v23 }
0x1024   :  { %2480 = vmatprep.subr.bf16.mxu0 %v2677_v1 }
0x1027   :  { %v2604_v45 = vpop.eup %2603 }
0x1028   :  { %v1492_v18 = vmul.f32 %v2604_v45, %v2598_v56  ;;  %v2252_v45 = vld [vmem:[%s3277_s7 + $0x1] ss:$0 sm:$0xff] }
0x102a   :  { %v1494_v11 = vpack.c.bf16 %v1492_v18, %v1492_v18 }
0x102b   :  { %v2606_v2 = vpop.eup %2605 }
0x102c   :  { %v2608_v12 = vpop.eup %2607  ;;  %v1493_v4 = vmul.f32 %v2606_v2, %v2602_v58  ;;  %2465 = vmatmul.mubr.msk.bf16.vlgmr.msra.gmra.mxu1 %vm439_vm10, %v1494_v11  ;;  %v2253_v2 = vld [vmem:[%s3278_s8 + $0x1] ss:$0 sm:$0xff] }
0x102d   :  { %2475 = vmatpush3.bf16.msra.mxu1 %v1605_v13  ;;  %2476 = vmatprep.mubr.msk.bf16.mxu1 %vm2678_vm0, %v2677_v1  ;;  %v2610_v16 = vpop.eup %2609  ;;  %v1364_v17 = vmul.f32 %v2608_v12, %v2596_v51 }
0x102e   :  { %v1495_v14 = vpack.c.bf16 %v1493_v4, %v1493_v4  ;;  %2486 = vmatprep.subr.bf16.mxu1 %v2677_v1  ;;  %v1365_v21 = vmul.f32 %v2610_v16, %v2600_v53 }
0x102f   :  { %v1366_v25 = vpack.c.bf16 %v1364_v17, %v1364_v17 }
0x1030   :  { %2471 = vmatmul.mubr.msk.bf16.vlgmr.msra.gmra.mxu0 %vm439_vm10, %v1495_v14  ;;  %v1367_v27 = vpack.c.bf16 %v1365_v21, %v1365_v21 }
0x1031   :  { %2481 = vmatpush3.bf16.msra.mxu0 %v1654_v20  ;;  %2482 = vmatprep.mubr.msk.bf16.mxu0 %vm2678_vm0, %v2677_v1 }
0x1032   :  { %2494 = vmatprep.subr.bf16.mxu0 %v2677_v1 }
0x1034   :  { %2477 = vmatmul.mubr.msk.bf16.vlgmr.msra.gmra.mxu1 %vm439_vm10, %v1366_v25 }
0x1035   :  { %2490 = vmatprep.mubr.msk.bf16.mxu1 %vm2678_vm0, %v2677_v1  ;;  %2487 = vmatpush3.bf16.msra.mxu1 %v2551_v28 }
0x1036   :  { %2488 = vmatprep.subr.bf16.mxu1 %v2677_v1 }
0x1038   :  { %2483 = vmatmul.mubr.msk.bf16.vlgmr.msra.gmra.mxu0 %vm439_vm10, %v1367_v27 }
0x1039   :  { %2498 = vmatprep.mubr.msk.bf16.mxu0 %vm2678_vm0, %v2677_v1  ;;  %2489 = vmatpush3.bf16.msra.mxu1 %v2552_v29 }
0x103a   :  { %2502 = vmatprep.subr.bf16.mxu1 %v2677_v1 }
0x10ec   :  { %v1543_v31 = vpop.f32.mrf.mxu1 }
0x10ee   :  { %v2466_v32 = vpop.f32.mrf.mxu1 }
0x10f0   :  { %v1592_v15 = vpop.f32.mrf.mxu0  ;;  %v1546_v33 = vpop.f32.mrf.mxu1 }
0x10f2   :  { %v2472_v55 = vpop.f32.mrf.mxu0  ;;  %v2467_v30 = vpop.f32.mrf.mxu1 }
0x10f3   :  { %v2553_v55 = vld [vmem:[%s3281_s11 + $0x18] sm:$0xff]   ;;  %v2554_v30 = vld [vmem:[%s3281_s11 + $0x10] sm:$0xff]  }
0x10f4   :  { %v1595_v36 = vpop.f32.mrf.mxu0  ;;  %v1641_v61 = vpop.f32.mrf.mxu1  ;;  %2495 = vmatpush3.bf16.msra.mxu0 %v2553_v55 }
0x10f5   :  { %v1642_v40 = vadd.f32 %v1641_v61, %v1543_v31  ;;  %2496 = vmatprep.subr.bf16.mxu0 %v2677_v1 }
0x10f6   :  { %v2473_v37 = vpop.f32.mrf.mxu0  ;;  %v2478_v19 = vpop.f32.mrf.mxu1 }
0x10f8   :  { %v1690_v38 = vpop.f32.mrf.mxu0  ;;  %v1644_v41 = vpop.f32.mrf.mxu1  ;;  %2497 = vmatpush3.bf16.msra.mxu0 %v2554_v30 }
0x10f9   :  { %v1691_v43 = vadd.f32 %v1690_v38, %v1592_v15  ;;  %2514 = vmatprep.subr.mxu0 %v2677_v1 }
0x10fa   :  { %v2484_v42 = vpop.f32.mrf.mxu0  ;;  %v2479_v46 = vpop.f32.mrf.mxu1 }
0x10fb   :  { %v1696_v44 = vpack.c.bf16 %v1691_v43, %v1642_v40  ;;  %v2254_v42 = vld [vmem:[%s3279_s9 + $0x1] ss:$0 sm:$0xff] }
0x10fc   :  { %v1693_v47 = vpop.f32.mrf.mxu0 }
0x10fd   :  { %2491 = vmatmul.mubr.msk.bf16.vlgmr.msra.gmra.mxu1 %vm111_vm3, %v1696_v44 }
0x10fe   :  { %v2485_v48 = vpop.f32.mrf.mxu0  ;;  %2510 = vmatprep.mubr.msk.bf16.mxu1 %vm2678_vm0, %v2677_v1 }
0x10ff   :  { %v2255_v48 = vld [vmem:[%s3280_s10 + $0x1] ss:$0 sm:$0xff] }
0x11bd   :  { %v1746_v49 = vpop.f32.mrf.mxu1 }
0x11be   :  { %v3171_v50 = vadd.f32 %v1746_v49, %v3044_v63 }
0x11bf   :  { %v2492_v51 = vpop.f32.mrf.mxu1 }
0x11c0   :  { %v1755_v52 = vsel %vm111_vm3, %v3171_v50, 0.0 }
0x11c1   :  { %1756 = vadd.xlane.f32.xlu0 %v1755_v52  ;;  %v1749_v56 = vpop.f32.mrf.mxu1 }
0x11c2   :  { %v3176_v53 = vadd.f32 %v1749_v56, %v3049_v8 }
0x11c3   :  { %v2493_v57 = vpop.f32.mrf.mxu1 }
0x11c4   :  { %v1758_v58 = vsel %vm111_vm3, %v3176_v53, 0.0  ;;  %v2555_v57 = vld [vmem:[%s3283_s13 + $0x38] sm:$0xff]  }
0x11c5   :  { %1759 = vadd.xlane.f32.xlu1 %v1758_v58  ;;  %2503 = vmatpush3.bf16.msra.mxu1 %v2555_v57  ;;  %v2556_v58 = vld [vmem:[%s3283_s13 + $0x30] sm:$0xff]   ;;  %v2061_v57 = vld [vmem:[%s3287_s17 + $0x8] sm:$0xff] }
0x11c6   :  { %2504 = vmatprep.subr.bf16.mxu1 %v2677_v1 }
0x11c9   :  { %2505 = vmatpush3.bf16.msra.mxu1 %v2556_v58  ;;  %v2060_v58 = vld [vmem:[%s3287_s17] sm:$0xff] }
0x11ca   :  { %2506 = vmatprep.subr.bf16.mxu1 %v2677_v1 }
0x124a   :  { %v1757_v54 = vpop.xlane.xlu0 %1756 }
0x124b   :  { %v1761_v59 = vmul.f32 0.03125, %v1757_v54  ;;  %v2557_v54 = vld [vmem:[%s3283_s13 + $0x28] sm:$0xff]  }
0x124c   :  { %2507 = vmatpush3.bf16.msra.mxu1 %v2557_v54 }
0x124d   :  { %v1763_v60 = vsub.f32 %v3171_v50, %v1761_v59  ;;  %2508 = vmatprep.subr.bf16.mxu1 %v2677_v1  ;;  %v2558_v59 = vld [vmem:[%s3283_s13 + $0x20] sm:$0xff]  }
0x124e   :  { %v1760_v63 = vpop.xlane.xlu1 %1759 }
0x124f   :  { %v1762_v62 = vmul.f32 0.03125, %v1760_v63  ;;  %v1765_v0 = vmul.f32 %v1763_v60, %v1763_v60 }
0x1250   :  { %2509 = vmatpush3.bf16.msra.mxu1 %v2558_v59 }
0x1251   :  { %v1764_v5 = vsub.f32 %v3176_v53, %v1762_v62  ;;  %v1767_v6 = vsel %vm111_vm3, %v1765_v0, 0.0 }
0x1252   :  { %1768 = vadd.xlane.f32.xlu0 %v1767_v6 }
0x1253   :  { %v1766_v7 = vmul.f32 %v1764_v5, %v1764_v5 }
0x1255   :  { %v1770_v8 = vsel %vm111_vm3, %v1766_v7, 0.0 }
0x1256   :  { %1771 = vadd.xlane.f32.xlu0 %v1770_v8 }
0x12db   :  { %v1769_v9 = vpop.xlane.xlu0 %1768 }
0x12dc   :  { %v1773_v35 = vmul.f32 0.03125, %v1769_v9 }
0x12de   :  { %v1775_v34 = vadd.f32 1e-05, %v1773_v35 }
0x12df   :  { %v1772_v39 = vpop.xlane.xlu0 %1771 }
0x12e0   :  { %2611 = vrsqrt.f32 %v1775_v34  ;;  %v1774_v10 = vmul.f32 0.03125, %v1772_v39 }
0x12e2   :  { %v1776_v23 = vadd.f32 1e-05, %v1774_v10 }
0x12e4   :  { %2613 = vrsqrt.f32 %v1776_v23 }
0x12ed   :  { %v2612_v3 = vpop.eup %2611 }
0x12ee   :  { %v1779_v18 = vmul.f32 %v2612_v3, %v1763_v60  ;;  %v2256_v60 = vld [vmem:[%s3282_s12 + $0x1] ss:$0 sm:$0xff] }
0x12f0   :  { %v1787_v11 = vmul.f32 %v2252_v45, %v1779_v18 }
0x12f1   :  { %v2614_v12 = vpop.eup %2613 }
0x12f2   :  { %v1795_v4 = vadd.f32 %v2253_v2, %v1787_v11  ;;  %v1780_v13 = vmul.f32 %v2614_v12, %v1764_v5  ;;  %v2260_v11 = vld [vmem:[%s3284_s14 + $0x1] ss:$0 sm:$0xff] }
0x12f4   :  { %v1797_v26 = vsel %vm111_vm3, %v1795_v4, 0.0  ;;  %v1788_v14 = vmul.f32 %v2252_v45, %v1780_v13 }
0x12f5   :  { %1798 = vadd.xlane.f32.xlu1 %v1797_v26 }
0x12f6   :  { %v1796_v16 = vadd.f32 %v2253_v2, %v1788_v14 }
0x12f8   :  { %v1800_v17 = vsel %vm111_vm3, %v1796_v16, 0.0 }
0x12f9   :  { %1801 = vadd.xlane.f32.xlu0 %v1800_v17 }
0x137e   :  { %v1799_v20 = vpop.xlane.xlu1 %1798 }
0x137f   :  { %v1803_v21 = vmul.f32 0.03125, %v1799_v20 }
0x1381   :  { %v1805_v25 = vsub.f32 %v1795_v4, %v1803_v21 }
0x1382   :  { %v1802_v27 = vpop.xlane.xlu0 %1801 }
0x1383   :  { %v1804_v28 = vmul.f32 0.03125, %v1802_v27  ;;  %v1807_v29 = vmul.f32 %v1805_v25, %v1805_v25 }
0x1385   :  { %v1806_v31 = vsub.f32 %v1796_v16, %v1804_v28  ;;  %v1809_v32 = vsel %vm111_vm3, %v1807_v29, 0.0 }
0x1386   :  { %1810 = vadd.xlane.f32.xlu1 %v1809_v32 }
0x1387   :  { %v1808_v15 = vmul.f32 %v1806_v31, %v1806_v31 }
0x1389   :  { %v1812_v33 = vsel %vm111_vm3, %v1808_v15, 0.0 }
0x138a   :  { %1813 = vadd.xlane.f32.xlu0 %v1812_v33 }
0x140f   :  { %v1811_v36 = vpop.xlane.xlu1 %1810 }
0x1410   :  { %v1815_v61 = vmul.f32 0.03125, %v1811_v36 }
0x1412   :  { %v1817_v37 = vadd.f32 1e-05, %v1815_v61 }
0x1413   :  { %v1814_v19 = vpop.xlane.xlu0 %1813 }
0x1414   :  { %2615 = vrsqrt.f32 %v1817_v37  ;;  %v1816_v38 = vmul.f32 0.03125, %v1814_v19 }
0x1416   :  { %v1818_v40 = vadd.f32 1e-05, %v1816_v38 }
0x1418   :  { %2617 = vrsqrt.f32 %v1818_v40 }
0x1421   :  { %v2616_v41 = vpop.eup %2615 }
0x1422   :  { %v1821_v43 = vmul.f32 %v2616_v41, %v1805_v25 }
0x1424   :  { %v1829_v47 = vmul.f32 %v2254_v42, %v1821_v43 }
0x1425   :  { %v2618_v44 = vpop.eup %2617 }
0x1426   :  { %v1822_v46 = vmul.f32 %v2618_v44, %v1806_v31  ;;  %v1837_v51 = vadd.f32 %v2255_v48, %v1829_v47 }
0x1428   :  { %v1830_v49 = vmul.f32 %v2254_v42, %v1822_v46 }
0x142a   :  { %v1838_v52 = vadd.f32 %v2255_v48, %v1830_v49 }
0x142c   :  { %v1839_v56 = vpack.c.bf16 %v1838_v52, %v1837_v51  ;;  %v2063_v52 = vld [vmem:[%s3287_s17 + $0x18] sm:$0xff] }
0x142e   :  { %2499 = vmatmul.mubr.msk.bf16.vlgmr.msra.gmra.mxu0 %vm111_vm3, %v1839_v56  ;;  %v2062_v56 = vld [vmem:[%s3287_s17 + $0x10] sm:$0xff] }
0x142f   :  { %2522 = vmatprep.mubr.msk.f32.mxu0 %vm2678_vm0, %v2677_v1  ;;  %2515 = vmatpush3.msra.mxu0 %v2063_v52 }
0x1430   :  { %2516 = vmatprep.subr.mxu0 %v2677_v1 }
0x1431   :  { %2517 = vmatpush3.msra.mxu0 %v2062_v56 }
0x1432   :  { %2518 = vmatprep.subr.mxu0 %v2677_v1 }
0x1433   :  { %2519 = vmatpush3.msra.mxu0 %v2061_v57 }
0x1434   :  { %2520 = vmatprep.subr.mxu0 %v2677_v1 }
0x1435   :  { %2521 = vmatpush3.msra.mxu0 %v2060_v58 }
0x14ee   :  { %v1895_v63 = vpop.f32.mrf.mxu0 }
0x14ef   :  { %v1896_v62 = vadd.f32 %v2256_v60, %v1895_v63 }
0x14f0   :  { %v2500_v0 = vpop.f32.mrf.mxu0 }
0x14f1   :  { %v1904_v5 = vmul.f32 0.70710677, %v1896_v62  ;;  %v1902_v10 = vmul.f32 0.5, %v1896_v62 }
0x14f2   :  { %v1898_v6 = vpop.f32.mrf.mxu0 }
0x14f3   :  { %2619 = verf.f32 %v1904_v5  ;;  %v1899_v7 = vadd.f32 %v2256_v60, %v1898_v6  ;;  %v2266_v5 = vld [vmem:[%s3285_s15] ss:$0 sm:$0xff]  ;;  %s2682_s15 = smov [#allocation5]  }
0x14f4   :  { %v2501_v8 = vpop.f32.mrf.mxu0 }
0x14f5   :  { %v1905_v9 = vmul.f32 0.70710677, %v1899_v7  ;;  %v1903_v23 = vmul.f32 0.5, %v1899_v7 }
0x14f7   :  { %2621 = verf.f32 %v1905_v9  ;;  %v2267_v9 = vld [vmem:[%s3286_s16] ss:$0 sm:$0xff]  ;;  %s2161_s16 = sshll.u32 %s2682_s15, 4  ;;  %s2162_s16 = int_to_ptr.vmem [resolvable:$true] %s2161_s16 }
0x14f8   :  { %s2649_s0 = scalar_lea.vmem %s2162_s16, 32  ;;  %p2654_p6 = scmp.lt.s32.totalorder %s2162_s16, %s2162_s16 }
0x14f9   :  { %p2650_p5 = scmp.ne.s32.totalorder %s2162_s16, %s2649_s0  ;;  %p2655_p7 = scmp.lt.s32.totalorder %s2649_s0, %s2649_s0 }
0x14fb   :  { %p2656_p8 = por %p2655_p7, %p2654_p6 }
0x14fd   :  { %p2657_p9 = pnand %p2656_p8, %p2650_p5 }
0x1500   :  { %v2620_v35 = vpop.eup %2619 }
0x1501   :  { %v1908_v34 = vadd.f32 1.0, %v2620_v35 }
0x1503   :  { %v1910_v45 = vmul.f32 %v1908_v34, %v1902_v10  ;;  %v2268_v10 = vld [vmem:[%s3288_s18] ss:$0 sm:$0xff] }
0x1504   :  { %v2622_v39 = vpop.eup %2621 }
0x1505   :  { %v1909_v3 = vadd.f32 1.0, %v2622_v39 }
0x1507   :  { %v1911_v18 = vmul.f32 %v1909_v3, %v1903_v23 }
0x1509   :  { %v1912_v2 = vpack.c.bf16 %v1911_v18, %v1910_v45 }
0x150b   :  { %2511 = vmatmul.mubr.msk.bf16.vlgmr.msra.gmra.mxu1 %vm1050_vm12, %v1912_v2 }
0x15cb   :  { %v1980_v12 = vpop.f32.mrf.mxu1 }
0x15cc   :  { %v1981_v4 = vadd.f32 %v2260_v11, %v1980_v12 }
0x15cd   :  { %v2512_v13 = vpop.f32.mrf.mxu1 }
0x15ce   :  { %v1987_v26 = vadd.f32 %v1981_v4, %v3171_v50 }
0x15cf   :  { %v1983_v14 = vpop.f32.mrf.mxu1 }
0x15d0   :  { %v1989_v16 = vmul.f32 %v1987_v26, %v2902_v22  ;;  %v1984_v17 = vadd.f32 %v2260_v11, %v1983_v14 }
0x15d1   :  { %v2513_v20 = vpop.f32.mrf.mxu1 }
0x15d2   :  { %v1991_v21 = vsel %vm111_vm3, %v1989_v16, 0.0  ;;  %v1988_v25 = vadd.f32 %v1984_v17, %v3176_v53 }
0x15d3   :  { %v1992_v27 = vrot.slane %v1991_v21, 4 }
0x15d4   :  { %v1990_v28 = vmul.f32 %v1988_v25, %v2904_v24 }
0x15d5   :  { %v1993_v29 = vadd.f32 %v1992_v27, %v1991_v21 }
0x15d6   :  { %v1998_v31 = vsel %vm111_vm3, %v1990_v28, 0.0 }
0x15d7   :  { %v1994_v32 = vrot.slane %v1993_v29, 2  ;;  %v1999_v15 = vrot.slane %v1998_v31, 4 }
0x15d9   :  { %v2000_v33 = vadd.f32 %v1999_v15, %v1998_v31  ;;  %v1995_v55 = vadd.f32 %v1994_v32, %v1993_v29 }
0x15db   :  { %v2001_v50 = vrot.slane %v2000_v33, 2  ;;  %v1996_v30 = vrot.slane %v1995_v55, 1 }
0x15dd   :  { %v2002_v36 = vadd.f32 %v2001_v50, %v2000_v33  ;;  %v1997_v22 = vadd.f32 %v1996_v30, %v1995_v55 }
0x15df   :  { %v2003_v61 = vrot.slane %v2002_v36, 1  ;;  %v2005_v19 = vmul.f32 0.125, %v1997_v22 }
0x15e1   :  { %v2004_v37 = vadd.f32 %v2003_v61, %v2002_v36 }
0x15e3   :  { %v2006_v38 = vmul.f32 0.125, %v2004_v37 }
0x15e5   :  { %v2012_v53 = vsel %vm2011_vm13, %v2006_v38, %v2005_v19 }
0x15e6   :  { %v2015_v24 = vsel %vm2014_vm14, %v2012_v53, 0.0 }
0x15e7   :  { %2016 = vadd.xlane.f32.xlu1 %v2015_v24 }
0x1670   :  { %v2017_v40 = vpop.xlane.xlu1 %2016 }
0x1671   :  { %v2018_v41 = vmul.f32 0.03125, %v2017_v40 }
0x1673   :  { %v2020_v43 = vrot.slane %v2018_v41, 1  ;;  %v2023_v42 = vsub.f32 %v2005_v19, %v2018_v41 }
0x1675   :  { %v2024_v44 = vsub.f32 %v2006_v38, %v2020_v43  ;;  %v2025_v47 = vmul.f32 %v2023_v42, %v2023_v42 }
0x1677   :  { %v2026_v46 = vmul.f32 %v2024_v44, %v2024_v44 }
0x1679   :  { %v2029_v48 = vrot.slane %v2026_v46, 7 }
0x167b   :  { %v2030_v49 = vsel %vm2011_vm13, %v2029_v48, %v2025_v47 }
0x167c   :  { %v2032_v51 = vsel %vm2014_vm14, %v2030_v49, 0.0 }
0x167d   :  { %2033 = vadd.xlane.f32.xlu0 %v2032_v51 }
0x1706   :  { %v2034_v54 = vpop.xlane.xlu0 %2033 }
0x1707   :  { %v2035_v59 = vmul.f32 0.03125, %v2034_v54 }
0x1709   :  { %v2036_v60 = vadd.f32 1e-05, %v2035_v59 }
0x170b   :  { %2623 = vrsqrt.f32 %v2036_v60 }
0x1718   :  { %v2624_v63 = vpop.eup %2623 }
0x1719   :  { %v2039_v62 = vrot.slane %v2624_v63, 1  ;;  %v2042_v0 = vmul.f32 %v2624_v63, %v2023_v42 }
0x171b   :  { %v2043_v6 = vmul.f32 %v2039_v62, %v2024_v44  ;;  %v2050_v7 = vmul.f32 %v2266_v5, %v2042_v0 }
0x171d   :  { %v2051_v8 = vmul.f32 %v2266_v5, %v2043_v6  ;;  %v2058_v35 = vadd.f32 %v2267_v9, %v2050_v7 }
0x171f   :  { %v2059_v1 = vadd.f32 %v2267_v9, %v2051_v8 }
0x1721   :  { %v2073_v34 = vrot.slane %v2059_v1, 7 }
0x1723   :  { %v2074_v39 = vsel %vm2011_vm13, %v2073_v34, %v2058_v35 }
0x1724   :  { %2523 = vmatmul.mubr.msk.f32.vlgmr.msra.gmra.mxu0 %vm111_vm3, %v2074_v39 }
0x17e4   :  { %v2143_v23 = vpop.f32.mrf.mxu0 }
0x17e5   :  { %v2144_v3 = vadd.f32 %v2268_v10, %v2143_v23 }
0x17e6   :  { %v2524_v45 = vpop.f32.mrf.mxu0 }
0x17e7   :  { %v2147_v18 = vsub.f32 0.0, %v2144_v3 }
0x17e9   :  { %v2148_v2 = vmul.f32 1.442695, %v2147_v18 }
0x17eb   :  { %2625 = vpow2.f32 %v2148_v2 }
0x17f8   :  { %v2626_v11 = vpop.eup %2625 }
0x17f9   :  { %v2150_v12 = vadd.f32 1.0, %v2626_v11 }
0x17fb   :  { %2627 = vrcp.f32 %v2150_v12 }
0x1808   :  { %v2628_v4 = vpop.eup %2627 }
0x1809   :  { %2154 = vst.msk [vmem:[#allocation5] sm:$0x3] %vm2153_vm15, %v2628_v4 }
0x180a   :  { %2660 = shalt.err (!%p2657_p9)
}
0x180b   :  { %2164 = dma.vmem_to_hbm [thread:$0]  %s2162_s16, 32, %s3289_s19, [#allocation4]  }
0x180c   :  { %2671 = dma.done.wait [#allocation4], 32  }
0x180d   :  { %2672 = vsyncadd [#allocation4], 4294967264 }
0x180e   :  { %2168 = vsyncpa [#allocation3], 1 }
0x180f   :  { %2169 = vsyncpa [#allocation4], 1 }

</bundles_post_ra>
